<compile_context>
chip_gen: v6e
topology: v6e:2x2x1
jax: 0.10.0
libtpu: 0.0.40
codegen_flags: <defaults>
</compile_context>

<pallas_src>
import functools

import numpy as np
import jax
import jax.numpy as jnp
from jax import lax
from jax.experimental import pallas as pl
from jax.experimental.pallas import tpu as pltpu


def _round_up(x, m):
    return (x + m - 1) // m * m


# Kernel-internal gate order is [i, f, o, g]; PyTorch order is [i, f, g, o].
# _GATE_PERM[k] = PyTorch gate block that lands in padded block k.
_GATE_PERM = (0, 1, 3, 2)


def _lstm_kernel(x_ref, w_ih_ref, w_hh_ref, b_ref, w_fc_ref, b_fc_ref,
                 out_ref, h_ref, c_ref, gx_ref, *,
                 t_tile, bp, hp, seq_len, padded_time):
    """One grid step == one time-chunk of t_tile steps.

    x_ref   : (t_tile*bp, IP)   time-major, flattened (t, b) rows
    w_ih_ref: (IP, 4*hp)        gate order [i, f, o, g], lane-aligned blocks
    w_hh_ref: (hp, 4*hp)
    b_ref   : (1, 4*hp)         b_ih + b_hh, same gate layout
    w_fc_ref: (hp, OP)
    b_fc_ref: (1, OP)
    out_ref : (bp, OP)          written on the last chunk only
    h_ref/c_ref : (bp, hp)      persistent recurrent state (VMEM scratch)
    gx_ref  : (t_tile*bp, 4*hp) hoisted pre-gates for this chunk
    """
    t_chunk = pl.program_id(0)
    n_chunks = pl.num_programs(0)

    @pl.when(t_chunk == 0)
    def _():
        h_ref[...] = jnp.zeros_like(h_ref)
        c_ref[...] = jnp.zeros_like(c_ref)

    # Hoisted input projection: one big, well-shaped MXU matmul per chunk,
    # bias broadcast added once (not once per time step).
    gx_ref[...] = (
        jnp.dot(x_ref[...], w_ih_ref[...], preferred_element_type=jnp.float32)
        + b_ref[...])

    w_hh = w_hh_ref[...]          # hoisted once; VMEM-resident, fed to the MXU
    h0 = h_ref[...]
    c0 = c_ref[...]

    def step(t, carry):
        h, c = carry
        row = pl.multiple_of(t * bp, bp)
        gx = gx_ref[pl.ds(row, bp), :]                      # (bp, 4*hp)
        gates = gx + jnp.dot(h, w_hh, preferred_element_type=jnp.float32)
        # One batched sigmoid over the contiguous [i | f | o] slab, one tanh
        # over the [g] block — all slices are 128-lane aligned (EUP work).
        sig = jax.nn.sigmoid(gates[:, 0:3 * hp])
        i_g = sig[:, 0:hp]
        f_g = sig[:, hp:2 * hp]
        o_g = sig[:, 2 * hp:3 * hp]
        g_g = jnp.tanh(gates[:, 3 * hp:4 * hp])
        c_new = f_g * c + i_g * g_g
        h_new = o_g * jnp.tanh(c_new)
        if padded_time:
            # Only emitted when T was padded up to a multiple of t_tile:
            # padded trailing steps must not advance the state.
            valid = (t_chunk * t_tile + t) < seq_len
            c_new = jnp.where(valid, c_new, c)
            h_new = jnp.where(valid, h_new, h)
        return h_new, c_new

    # Fully unrolled recurrence; h/c stay in vregs across the chunk.
    h_fin, c_fin = lax.fori_loop(0, t_tile, step, (h0, c0), unroll=True)

    # Write the recurrent state back to VMEM only if a later chunk reads it.
    @pl.when(t_chunk < n_chunks - 1)
    def _():
        h_ref[...] = h_fin
        c_ref[...] = c_fin

    @pl.when(t_chunk == n_chunks - 1)
    def _():
        out_ref[...] = (
            jnp.dot(h_fin, w_fc_ref[...], preferred_element_type=jnp.float32)
            + b_fc_ref[...])


def lstm_regression(x, params, *, t_tile_max=32):
    """x: (B, T, I) float32 (PyTorch batch_first layout). Returns (B, O)."""
    w_ih, w_hh, b_ih, b_hh, w_fc, b_fc = (params[k] for k in
                                          ("w_ih", "w_hh", "b_ih", "b_hh",
                                           "w_fc", "b_fc"))
    B, T, I = x.shape
    H = w_hh.shape[1]
    O = w_fc.shape[0]

    BP = _round_up(B, 8)      # sublane-full batch tile
    IP = _round_up(I, 128)    # lane-aligned input features
    HP = _round_up(H, 128)    # lane-aligned hidden (each gate = one 128 block)
    OP = _round_up(O, 128)    # lane-dense output

    T_TILE = min(T, t_tile_max)
    n_chunks = pl.cdiv(T, T_TILE)
    T_PAD = n_chunks * T_TILE

    f32 = jnp.float32

    # x -> time-major, zero-padded, flattened to 2D (T_PAD*BP, IP) so each grid
    # step streams one aligned (T_TILE*BP, IP) block from HBM.
    x_tm = jnp.zeros((T_PAD, BP, IP), f32)
    x_tm = x_tm.at[:T, :B, :I].set(jnp.transpose(x, (1, 0, 2)).astype(f32))
    x2d = x_tm.reshape(T_PAD * BP, IP)

    def pack_gates(w_t, rows):
        # w_t: (rows_real, 4H), columns in PyTorch gate order [i, f, g, o].
        # Place each gate's H real columns at a 128-aligned offset, reordered
        # to the kernel's [i, f, o, g] layout; padding stays zero.
        out = jnp.zeros((rows, 4 * HP), f32)
        r = w_t.shape[0]
        for k, g in enumerate(_GATE_PERM):
            out = out.at[:r, k * HP:k * HP + H].set(w_t[:, g * H:(g + 1) * H])
        return out

    w_ih_p = pack_gates(jnp.transpose(w_ih).astype(f32), IP)              # (IP, 4HP)
    w_hh_p = pack_gates(jnp.transpose(w_hh).astype(f32), HP)              # (HP, 4HP)
    b_p = pack_gates((b_ih + b_hh).astype(f32).reshape(1, 4 * H), 1)      # (1, 4HP)
    w_fc_p = jnp.zeros((HP, OP), f32).at[:H, :O].set(
        jnp.transpose(w_fc).astype(f32))                                  # (HP, OP)
    b_fc_p = jnp.zeros((1, OP), f32).at[0, :O].set(b_fc.astype(f32))      # (1, OP)

    kernel = functools.partial(
        _lstm_kernel, t_tile=T_TILE, bp=BP, hp=HP,
        seq_len=T, padded_time=(T_PAD != T))

    out_p = pl.pallas_call(
        kernel,
        out_shape=jax.ShapeDtypeStruct((BP, OP), f32),
        grid_spec=pltpu.PrefetchScalarGridSpec(
            num_scalar_prefetch=0,
            grid=(n_chunks,),
            in_specs=[
                pl.BlockSpec((T_TILE * BP, IP), lambda t: (t, 0)),   # x chunk
                pl.BlockSpec((IP, 4 * HP), lambda t: (0, 0)),        # W_ih
                pl.BlockSpec((HP, 4 * HP), lambda t: (0, 0)),        # W_hh
                pl.BlockSpec((1, 4 * HP), lambda t: (0, 0)),         # bias
                pl.BlockSpec((HP, OP), lambda t: (0, 0)),            # W_fc
                pl.BlockSpec((1, OP), lambda t: (0, 0)),             # b_fc
            ],
            out_specs=pl.BlockSpec((BP, OP), lambda t: (0, 0)),
            scratch_shapes=[
                pltpu.VMEM((BP, HP), f32),                # h state
                pltpu.VMEM((BP, HP), f32),                # c state
                pltpu.VMEM((T_TILE * BP, 4 * HP), f32),   # hoisted pre-gates
            ],
        ),
        compiler_params=pltpu.CompilerParams(
            dimension_semantics=("arbitrary",),   # time recurrence is serial
            vmem_limit_bytes=32 * 1024 * 1024,    # fits v5e/v6e/v7x with headroom
        ),
    )(x2d, w_ih_p, w_hh_p, b_p, w_fc_p, b_fc_p)

    return out_p[:B, :O]


def init_params(key, input_size, hidden_size, output_size):
    """Deterministic init matching PyTorch shapes: U(-1/sqrt(H), 1/sqrt(H))."""
    ks = jax.random.split(key, 6)
    H = hidden_size
    bound = 1.0 / np.sqrt(H)
    u = lambda k, shape: jax.random.uniform(k, shape, jnp.float32, -bound, bound)
    return {
        "w_ih": u(ks[0], (4 * H, input_size)),   # weight_ih_l0
        "w_hh": u(ks[1], (4 * H, H)),            # weight_hh_l0
        "b_ih": u(ks[2], (4 * H,)),              # bias_ih_l0
        "b_hh": u(ks[3], (4 * H,)),              # bias_hh_l0
        "w_fc": u(ks[4], (output_size, H)),      # fc.weight
        "b_fc": u(ks[5], (output_size,)),        # fc.bias
    }


def reference_forward(x, p):
    """Pure-JAX reference of the PyTorch forward (gate order [i, f, g, o])."""
    B, T, I = x.shape
    H = p["w_hh"].shape[1]
    h = jnp.zeros((B, H), jnp.float32)
    c = jnp.zeros((B, H), jnp.float32)
    for t in range(T):
        g = x[:, t, :] @ p["w_ih"].T + p["b_ih"] + h @ p["w_hh"].T + p["b_hh"]
        i = jax.nn.sigmoid(g[:, 0:H])
        f = jax.nn.sigmoid(g[:, H:2 * H])
        gg = jnp.tanh(g[:, 2 * H:3 * H])
        o = jax.nn.sigmoid(g[:, 3 * H:4 * H])
        c = f * c + i * gg
        h = o * jnp.tanh(c)
    return h @ p["w_fc"].T + p["b_fc"]


if __name__ == "__main__":
    key = jax.random.PRNGKey(0)
    k_x, k_p = jax.random.split(key)

    batch, seq_len, input_size = 2, 8, 4
    hidden_size, output_size = 10, 1

    x = jax.random.normal(k_x, (batch, seq_len, input_size), jnp.float32)
    params = init_params(k_p, input_size, hidden_size, output_size)

    # jit the wrapper so the host-side padding / weight packing fuses into one
    # XLA program around the pallas_call.
    lstm_fn = jax.jit(lstm_regression)
    out = lstm_fn(x, params)
    out = jax.block_until_ready(out)

    ref = reference_forward(x, params)
    np.testing.assert_allclose(np.asarray(out), np.asarray(ref),
                               rtol=1e-5, atol=1e-5)
    print("KERNEL_OK")
</pallas_src>

<mosaic_0001>
module attributes {stable_mosaic.version = 11 : i64} {
  func.func @_lstm_kernel(%arg0: i32, %arg1: memref<64x128xf32, #tpu.memory_space<vmem>>, %arg2: memref<128x512xf32, #tpu.memory_space<vmem>>, %arg3: memref<128x512xf32, #tpu.memory_space<vmem>>, %arg4: memref<1x512xf32, #tpu.memory_space<vmem>>, %arg5: memref<128x128xf32, #tpu.memory_space<vmem>>, %arg6: memref<1x128xf32, #tpu.memory_space<vmem>>, %arg7: memref<8x128xf32, #tpu.memory_space<vmem>>, %arg8: memref<8x128xf32, #tpu.memory_space<vmem>>, %arg9: memref<8x128xf32, #tpu.memory_space<vmem>>, %arg10: memref<64x512xf32, #tpu.memory_space<vmem>>) attributes {dimension_semantics = [#tpu.dimension_semantics<arbitrary>], iteration_bounds = array<i64: 1>, scalar_prefetch = 0 : i64, scratch_operands = 3 : i64, tpu.core_type = #tpu.core_type<tc>, window_params = [{transform_indices = @transform_0, window_bounds = array<i64: 64, 128>}, {pipeline_mode = #tpu.pipeline_mode<synchronous>, transform_indices = @transform_1, window_bounds = array<i64: 128, 512>}, {pipeline_mode = #tpu.pipeline_mode<synchronous>, transform_indices = @transform_2, window_bounds = array<i64: 128, 512>}, {pipeline_mode = #tpu.pipeline_mode<synchronous>, transform_indices = @transform_3, window_bounds = array<i64: 1, 512>}, {pipeline_mode = #tpu.pipeline_mode<synchronous>, transform_indices = @transform_4, window_bounds = array<i64: 128, 128>}, {pipeline_mode = #tpu.pipeline_mode<synchronous>, transform_indices = @transform_5, window_bounds = array<i64: 1, 128>}, {pipeline_mode = #tpu.pipeline_mode<synchronous>, transform_indices = @transform_6, window_bounds = array<i64: 8, 128>}]} {
    %c0_i32 = arith.constant 0 : i32
    %0 = arith.cmpi eq, %arg0, %c0_i32 : i32
    %1 = arith.extui %0 : i1 to i32
    %c0_i32_0 = arith.constant 0 : i32
    %2 = arith.cmpi ne, %1, %c0_i32_0 : i32
    scf.if %2 {
      %cst_51 = arith.constant 0.000000e+00 : f32
      %195 = vector.broadcast %cst_51 : f32 to vector<8x128xf32>
      %c0_52 = arith.constant 0 : index
      %c0_53 = arith.constant 0 : index
      %196 = vector.load %arg8[%c0_52, %c0_53] : memref<8x128xf32, #tpu.memory_space<vmem>>, vector<8x128xf32>
      tpu.vector_store %arg8[%c0_52, %c0_53], %195 {strides = array<i32>} : memref<8x128xf32, #tpu.memory_space<vmem>>, vector<8x128xf32>,
      %cst_54 = arith.constant 0.000000e+00 : f32
      %197 = vector.broadcast %cst_54 : f32 to vector<8x128xf32>
      %c0_55 = arith.constant 0 : index
      %c0_56 = arith.constant 0 : index
      %198 = vector.load %arg9[%c0_55, %c0_56] : memref<8x128xf32, #tpu.memory_space<vmem>>, vector<8x128xf32>
      tpu.vector_store %arg9[%c0_55, %c0_56], %197 {strides = array<i32>} : memref<8x128xf32, #tpu.memory_space<vmem>>, vector<8x128xf32>,
    } else {
    }
    %c0 = arith.constant 0 : index
    %c0_1 = arith.constant 0 : index
    %3 = vector.load %arg1[%c0, %c0_1] : memref<64x128xf32, #tpu.memory_space<vmem>>, vector<64x128xf32>
    %c0_2 = arith.constant 0 : index
    %c0_3 = arith.constant 0 : index
    %4 = vector.load %arg2[%c0_2, %c0_3] : memref<128x512xf32, #tpu.memory_space<vmem>>, vector<128x512xf32>
    %cst = arith.constant dense<0.000000e+00> : vector<64x512xf32>
    %5 = tpu.matmul %3, %4, %cst {dimension_numbers = #tpu.dot_dimension_numbers<[1], [0], [0], [1], [0, 0, 1, 1], [], []>} : vector<64x128xf32>, vector<128x512xf32>, vector<64x512xf32> -> vector<64x512xf32>
    %c0_4 = arith.constant 0 : index
    %c0_5 = arith.constant 0 : index
    %6 = vector.load %arg4[%c0_4, %c0_5] : memref<1x512xf32, #tpu.memory_space<vmem>>, vector<1x512xf32>
    %7 = vector.broadcast %6 : vector<1x512xf32> to vector<64x512xf32>
    %8 = arith.addf %5, %7 : vector<64x512xf32>
    %c0_6 = arith.constant 0 : index
    %c0_7 = arith.constant 0 : index
    %9 = vector.load %arg10[%c0_6, %c0_7] : memref<64x512xf32, #tpu.memory_space<vmem>>, vector<64x512xf32>
    tpu.vector_store %arg10[%c0_6, %c0_7], %8 {strides = array<i32>} : memref<64x512xf32, #tpu.memory_space<vmem>>, vector<64x512xf32>,
    %c0_8 = arith.constant 0 : index
    %c0_9 = arith.constant 0 : index
    %10 = vector.load %arg3[%c0_8, %c0_9] : memref<128x512xf32, #tpu.memory_space<vmem>>, vector<128x512xf32>
    %c0_10 = arith.constant 0 : index
    %c0_11 = arith.constant 0 : index
    %11 = vector.load %arg8[%c0_10, %c0_11] : memref<8x128xf32, #tpu.memory_space<vmem>>, vector<8x128xf32>
    %c0_12 = arith.constant 0 : index
    %c0_13 = arith.constant 0 : index
    %12 = vector.load %arg9[%c0_12, %c0_13] : memref<8x128xf32, #tpu.memory_space<vmem>>, vector<8x128xf32>
    %c0_i32_14 = arith.constant 0 : i32
    %c8_i32 = arith.constant 8 : i32
    %13 = arith.muli %c0_i32_14, %c8_i32 : i32
    %14 = tpu.assume_multiple %13, 8 : i32
    %15 = arith.index_cast %14 : i32 to index
    %c0_15 = arith.constant 0 : index
    %16 = vector.load %arg10[%15, %c0_15] : memref<64x512xf32, #tpu.memory_space<vmem>>, vector<8x512xf32>
    %cst_16 = arith.constant dense<0.000000e+00> : vector<8x512xf32>
    %17 = tpu.matmul %11, %10, %cst_16 {dimension_numbers = #tpu.dot_dimension_numbers<[1], [0], [0], [1], [0, 0, 1, 1], [], []>} : vector<8x128xf32>, vector<128x512xf32>, vector<8x512xf32> -> vector<8x512xf32>
    %18 = arith.addf %16, %17 : vector<8x512xf32>
    %19 = vector.extract_strided_slice %18 {offsets = [0, 0], sizes = [8, 384], strides = [1, 1]} : vector<8x512xf32> to vector<8x384xf32>
    %20 = arith.negf %19 : vector<8x384xf32>
    %21 = math.exp %20 : vector<8x384xf32>
    %cst_17 = arith.constant 1.000000e+00 : f32
    %22 = vector.broadcast %cst_17 : f32 to vector<8x384xf32>
    %23 = arith.addf %22, %21 : vector<8x384xf32>
    %24 = arith.divf %22, %23 : vector<8x384xf32>
    %25 = vector.extract_strided_slice %24 {offsets = [0, 0], sizes = [8, 128], strides = [1, 1]} : vector<8x384xf32> to vector<8x128xf32>
    %26 = vector.extract_strided_slice %24 {offsets = [0, 128], sizes = [8, 128], strides = [1, 1]} : vector<8x384xf32> to vector<8x128xf32>
    %27 = vector.extract_strided_slice %24 {offsets = [0, 256], sizes = [8, 128], strides = [1, 1]} : vector<8x384xf32> to vector<8x128xf32>
    %28 = vector.extract_strided_slice %18 {offsets = [0, 384], sizes = [8, 128], strides = [1, 1]} : vector<8x512xf32> to vector<8x128xf32>
    %29 = math.tanh %28 : vector<8x128xf32>
    %30 = arith.mulf %26, %12 : vector<8x128xf32>
    %31 = arith.mulf %25, %29 : vector<8x128xf32>
    %32 = arith.addf %30, %31 : vector<8x128xf32>
    %33 = math.tanh %32 : vector<8x128xf32>
    %34 = arith.mulf %27, %33 : vector<8x128xf32>
    %c1_i32 = arith.constant 1 : i32
    %c8_i32_18 = arith.constant 8 : i32
    %35 = arith.muli %c1_i32, %c8_i32_18 : i32
    %36 = tpu.assume_multiple %35, 8 : i32
    %37 = arith.index_cast %36 : i32 to index
    %c0_19 = arith.constant 0 : index
    %38 = vector.load %arg10[%37, %c0_19] : memref<64x512xf32, #tpu.memory_space<vmem>>, vector<8x512xf32>
    %cst_20 = arith.constant dense<0.000000e+00> : vector<8x512xf32>
    %39 = tpu.matmul %34, %10, %cst_20 {dimension_numbers = #tpu.dot_dimension_numbers<[1], [0], [0], [1], [0, 0, 1, 1], [], []>} : vector<8x128xf32>, vector<128x512xf32>, vector<8x512xf32> -> vector<8x512xf32>
    %40 = arith.addf %38, %39 : vector<8x512xf32>
    %41 = vector.extract_strided_slice %40 {offsets = [0, 0], sizes = [8, 384], strides = [1, 1]} : vector<8x512xf32> to vector<8x384xf32>
    %42 = arith.negf %41 : vector<8x384xf32>
    %43 = math.exp %42 : vector<8x384xf32>
    %cst_21 = arith.constant 1.000000e+00 : f32
    %44 = vector.broadcast %cst_21 : f32 to vector<8x384xf32>
    %45 = arith.addf %44, %43 : vector<8x384xf32>
    %46 = arith.divf %44, %45 : vector<8x384xf32>
    %47 = vector.extract_strided_slice %46 {offsets = [0, 0], sizes = [8, 128], strides = [1, 1]} : vector<8x384xf32> to vector<8x128xf32>
    %48 = vector.extract_strided_slice %46 {offsets = [0, 128], sizes = [8, 128], strides = [1, 1]} : vector<8x384xf32> to vector<8x128xf32>
    %49 = vector.extract_strided_slice %46 {offsets = [0, 256], sizes = [8, 128], strides = [1, 1]} : vector<8x384xf32> to vector<8x128xf32>
    %50 = vector.extract_strided_slice %40 {offsets = [0, 384], sizes = [8, 128], strides = [1, 1]} : vector<8x512xf32> to vector<8x128xf32>
    %51 = math.tanh %50 : vector<8x128xf32>
    %52 = arith.mulf %48, %32 : vector<8x128xf32>
    %53 = arith.mulf %47, %51 : vector<8x128xf32>
    %54 = arith.addf %52, %53 : vector<8x128xf32>
    %55 = math.tanh %54 : vector<8x128xf32>
    %56 = arith.mulf %49, %55 : vector<8x128xf32>
    %c2_i32 = arith.constant 2 : i32
    %c8_i32_22 = arith.constant 8 : i32
    %57 = arith.muli %c2_i32, %c8_i32_22 : i32
    %58 = tpu.assume_multiple %57, 8 : i32
    %59 = arith.index_cast %58 : i32 to index
    %c0_23 = arith.constant 0 : index
    %60 = vector.load %arg10[%59, %c0_23] : memref<64x512xf32, #tpu.memory_space<vmem>>, vector<8x512xf32>
    %cst_24 = arith.constant dense<0.000000e+00> : vector<8x512xf32>
    %61 = tpu.matmul %56, %10, %cst_24 {dimension_numbers = #tpu.dot_dimension_numbers<[1], [0], [0], [1], [0, 0, 1, 1], [], []>} : vector<8x128xf32>, vector<128x512xf32>, vector<8x512xf32> -> vector<8x512xf32>
    %62 = arith.addf %60, %61 : vector<8x512xf32>
    %63 = vector.extract_strided_slice %62 {offsets = [0, 0], sizes = [8, 384], strides = [1, 1]} : vector<8x512xf32> to vector<8x384xf32>
    %64 = arith.negf %63 : vector<8x384xf32>
    %65 = math.exp %64 : vector<8x384xf32>
    %cst_25 = arith.constant 1.000000e+00 : f32
    %66 = vector.broadcast %cst_25 : f32 to vector<8x384xf32>
    %67 = arith.addf %66, %65 : vector<8x384xf32>
    %68 = arith.divf %66, %67 : vector<8x384xf32>
    %69 = vector.extract_strided_slice %68 {offsets = [0, 0], sizes = [8, 128], strides = [1, 1]} : vector<8x384xf32> to vector<8x128xf32>
    %70 = vector.extract_strided_slice %68 {offsets = [0, 128], sizes = [8, 128], strides = [1, 1]} : vector<8x384xf32> to vector<8x128xf32>
    %71 = vector.extract_strided_slice %68 {offsets = [0, 256], sizes = [8, 128], strides = [1, 1]} : vector<8x384xf32> to vector<8x128xf32>
    %72 = vector.extract_strided_slice %62 {offsets = [0, 384], sizes = [8, 128], strides = [1, 1]} : vector<8x512xf32> to vector<8x128xf32>
    %73 = math.tanh %72 : vector<8x128xf32>
    %74 = arith.mulf %70, %54 : vector<8x128xf32>
    %75 = arith.mulf %69, %73 : vector<8x128xf32>
    %76 = arith.addf %74, %75 : vector<8x128xf32>
    %77 = math.tanh %76 : vector<8x128xf32>
    %78 = arith.mulf %71, %77 : vector<8x128xf32>
    %c3_i32 = arith.constant 3 : i32
    %c8_i32_26 = arith.constant 8 : i32
    %79 = arith.muli %c3_i32, %c8_i32_26 : i32
    %80 = tpu.assume_multiple %79, 8 : i32
    %81 = arith.index_cast %80 : i32 to index
    %c0_27 = arith.constant 0 : index
    %82 = vector.load %arg10[%81, %c0_27] : memref<64x512xf32, #tpu.memory_space<vmem>>, vector<8x512xf32>
    %cst_28 = arith.constant dense<0.000000e+00> : vector<8x512xf32>
    %83 = tpu.matmul %78, %10, %cst_28 {dimension_numbers = #tpu.dot_dimension_numbers<[1], [0], [0], [1], [0, 0, 1, 1], [], []>} : vector<8x128xf32>, vector<128x512xf32>, vector<8x512xf32> -> vector<8x512xf32>
    %84 = arith.addf %82, %83 : vector<8x512xf32>
    %85 = vector.extract_strided_slice %84 {offsets = [0, 0], sizes = [8, 384], strides = [1, 1]} : vector<8x512xf32> to vector<8x384xf32>
    %86 = arith.negf %85 : vector<8x384xf32>
    %87 = math.exp %86 : vector<8x384xf32>
    %cst_29 = arith.constant 1.000000e+00 : f32
    %88 = vector.broadcast %cst_29 : f32 to vector<8x384xf32>
    %89 = arith.addf %88, %87 : vector<8x384xf32>
    %90 = arith.divf %88, %89 : vector<8x384xf32>
    %91 = vector.extract_strided_slice %90 {offsets = [0, 0], sizes = [8, 128], strides = [1, 1]} : vector<8x384xf32> to vector<8x128xf32>
    %92 = vector.extract_strided_slice %90 {offsets = [0, 128], sizes = [8, 128], strides = [1, 1]} : vector<8x384xf32> to vector<8x128xf32>
    %93 = vector.extract_strided_slice %90 {offsets = [0, 256], sizes = [8, 128], strides = [1, 1]} : vector<8x384xf32> to vector<8x128xf32>
    %94 = vector.extract_strided_slice %84 {offsets = [0, 384], sizes = [8, 128], strides = [1, 1]} : vector<8x512xf32> to vector<8x128xf32>
    %95 = math.tanh %94 : vector<8x128xf32>
    %96 = arith.mulf %92, %76 : vector<8x128xf32>
    %97 = arith.mulf %91, %95 : vector<8x128xf32>
    %98 = arith.addf %96, %97 : vector<8x128xf32>
    %99 = math.tanh %98 : vector<8x128xf32>
    %100 = arith.mulf %93, %99 : vector<8x128xf32>
    %c4_i32 = arith.constant 4 : i32
    %c8_i32_30 = arith.constant 8 : i32
    %101 = arith.muli %c4_i32, %c8_i32_30 : i32
    %102 = tpu.assume_multiple %101, 8 : i32
    %103 = arith.index_cast %102 : i32 to index
    %c0_31 = arith.constant 0 : index
    %104 = vector.load %arg10[%103, %c0_31] : memref<64x512xf32, #tpu.memory_space<vmem>>, vector<8x512xf32>
    %cst_32 = arith.constant dense<0.000000e+00> : vector<8x512xf32>
    %105 = tpu.matmul %100, %10, %cst_32 {dimension_numbers = #tpu.dot_dimension_numbers<[1], [0], [0], [1], [0, 0, 1, 1], [], []>} : vector<8x128xf32>, vector<128x512xf32>, vector<8x512xf32> -> vector<8x512xf32>
    %106 = arith.addf %104, %105 : vector<8x512xf32>
    %107 = vector.extract_strided_slice %106 {offsets = [0, 0], sizes = [8, 384], strides = [1, 1]} : vector<8x512xf32> to vector<8x384xf32>
    %108 = arith.negf %107 : vector<8x384xf32>
    %109 = math.exp %108 : vector<8x384xf32>
    %cst_33 = arith.constant 1.000000e+00 : f32
    %110 = vector.broadcast %cst_33 : f32 to vector<8x384xf32>
    %111 = arith.addf %110, %109 : vector<8x384xf32>
    %112 = arith.divf %110, %111 : vector<8x384xf32>
    %113 = vector.extract_strided_slice %112 {offsets = [0, 0], sizes = [8, 128], strides = [1, 1]} : vector<8x384xf32> to vector<8x128xf32>
    %114 = vector.extract_strided_slice %112 {offsets = [0, 128], sizes = [8, 128], strides = [1, 1]} : vector<8x384xf32> to vector<8x128xf32>
    %115 = vector.extract_strided_slice %112 {offsets = [0, 256], sizes = [8, 128], strides = [1, 1]} : vector<8x384xf32> to vector<8x128xf32>
    %116 = vector.extract_strided_slice %106 {offsets = [0, 384], sizes = [8, 128], strides = [1, 1]} : vector<8x512xf32> to vector<8x128xf32>
    %117 = math.tanh %116 : vector<8x128xf32>
    %118 = arith.mulf %114, %98 : vector<8x128xf32>
    %119 = arith.mulf %113, %117 : vector<8x128xf32>
    %120 = arith.addf %118, %119 : vector<8x128xf32>
    %121 = math.tanh %120 : vector<8x128xf32>
    %122 = arith.mulf %115, %121 : vector<8x128xf32>
    %c5_i32 = arith.constant 5 : i32
    %c8_i32_34 = arith.constant 8 : i32
    %123 = arith.muli %c5_i32, %c8_i32_34 : i32
    %124 = tpu.assume_multiple %123, 8 : i32
    %125 = arith.index_cast %124 : i32 to index
    %c0_35 = arith.constant 0 : index
    %126 = vector.load %arg10[%125, %c0_35] : memref<64x512xf32, #tpu.memory_space<vmem>>, vector<8x512xf32>
    %cst_36 = arith.constant dense<0.000000e+00> : vector<8x512xf32>
    %127 = tpu.matmul %122, %10, %cst_36 {dimension_numbers = #tpu.dot_dimension_numbers<[1], [0], [0], [1], [0, 0, 1, 1], [], []>} : vector<8x128xf32>, vector<128x512xf32>, vector<8x512xf32> -> vector<8x512xf32>
    %128 = arith.addf %126, %127 : vector<8x512xf32>
    %129 = vector.extract_strided_slice %128 {offsets = [0, 0], sizes = [8, 384], strides = [1, 1]} : vector<8x512xf32> to vector<8x384xf32>
    %130 = arith.negf %129 : vector<8x384xf32>
    %131 = math.exp %130 : vector<8x384xf32>
    %cst_37 = arith.constant 1.000000e+00 : f32
    %132 = vector.broadcast %cst_37 : f32 to vector<8x384xf32>
    %133 = arith.addf %132, %131 : vector<8x384xf32>
    %134 = arith.divf %132, %133 : vector<8x384xf32>
    %135 = vector.extract_strided_slice %134 {offsets = [0, 0], sizes = [8, 128], strides = [1, 1]} : vector<8x384xf32> to vector<8x128xf32>
    %136 = vector.extract_strided_slice %134 {offsets = [0, 128], sizes = [8, 128], strides = [1, 1]} : vector<8x384xf32> to vector<8x128xf32>
    %137 = vector.extract_strided_slice %134 {offsets = [0, 256], sizes = [8, 128], strides = [1, 1]} : vector<8x384xf32> to vector<8x128xf32>
    %138 = vector.extract_strided_slice %128 {offsets = [0, 384], sizes = [8, 128], strides = [1, 1]} : vector<8x512xf32> to vector<8x128xf32>
    %139 = math.tanh %138 : vector<8x128xf32>
    %140 = arith.mulf %136, %120 : vector<8x128xf32>
    %141 = arith.mulf %135, %139 : vector<8x128xf32>
    %142 = arith.addf %140, %141 : vector<8x128xf32>
    %143 = math.tanh %142 : vector<8x128xf32>
    %144 = arith.mulf %137, %143 : vector<8x128xf32>
    %c6_i32 = arith.constant 6 : i32
    %c8_i32_38 = arith.constant 8 : i32
    %145 = arith.muli %c6_i32, %c8_i32_38 : i32
    %146 = tpu.assume_multiple %145, 8 : i32
    %147 = arith.index_cast %146 : i32 to index
    %c0_39 = arith.constant 0 : index
    %148 = vector.load %arg10[%147, %c0_39] : memref<64x512xf32, #tpu.memory_space<vmem>>, vector<8x512xf32>
    %cst_40 = arith.constant dense<0.000000e+00> : vector<8x512xf32>
    %149 = tpu.matmul %144, %10, %cst_40 {dimension_numbers = #tpu.dot_dimension_numbers<[1], [0], [0], [1], [0, 0, 1, 1], [], []>} : vector<8x128xf32>, vector<128x512xf32>, vector<8x512xf32> -> vector<8x512xf32>
    %150 = arith.addf %148, %149 : vector<8x512xf32>
    %151 = vector.extract_strided_slice %150 {offsets = [0, 0], sizes = [8, 384], strides = [1, 1]} : vector<8x512xf32> to vector<8x384xf32>
    %152 = arith.negf %151 : vector<8x384xf32>
    %153 = math.exp %152 : vector<8x384xf32>
    %cst_41 = arith.constant 1.000000e+00 : f32
    %154 = vector.broadcast %cst_41 : f32 to vector<8x384xf32>
    %155 = arith.addf %154, %153 : vector<8x384xf32>
    %156 = arith.divf %154, %155 : vector<8x384xf32>
    %157 = vector.extract_strided_slice %156 {offsets = [0, 0], sizes = [8, 128], strides = [1, 1]} : vector<8x384xf32> to vector<8x128xf32>
    %158 = vector.extract_strided_slice %156 {offsets = [0, 128], sizes = [8, 128], strides = [1, 1]} : vector<8x384xf32> to vector<8x128xf32>
    %159 = vector.extract_strided_slice %156 {offsets = [0, 256], sizes = [8, 128], strides = [1, 1]} : vector<8x384xf32> to vector<8x128xf32>
    %160 = vector.extract_strided_slice %150 {offsets = [0, 384], sizes = [8, 128], strides = [1, 1]} : vector<8x512xf32> to vector<8x128xf32>
    %161 = math.tanh %160 : vector<8x128xf32>
    %162 = arith.mulf %158, %142 : vector<8x128xf32>
    %163 = arith.mulf %157, %161 : vector<8x128xf32>
    %164 = arith.addf %162, %163 : vector<8x128xf32>
    %165 = math.tanh %164 : vector<8x128xf32>
    %166 = arith.mulf %159, %165 : vector<8x128xf32>
    %c7_i32 = arith.constant 7 : i32
    %c8_i32_42 = arith.constant 8 : i32
    %167 = arith.muli %c7_i32, %c8_i32_42 : i32
    %168 = tpu.assume_multiple %167, 8 : i32
    %169 = arith.index_cast %168 : i32 to index
    %c0_43 = arith.constant 0 : index
    %170 = vector.load %arg10[%169, %c0_43] : memref<64x512xf32, #tpu.memory_space<vmem>>, vector<8x512xf32>
    %cst_44 = arith.constant dense<0.000000e+00> : vector<8x512xf32>
    %171 = tpu.matmul %166, %10, %cst_44 {dimension_numbers = #tpu.dot_dimension_numbers<[1], [0], [0], [1], [0, 0, 1, 1], [], []>} : vector<8x128xf32>, vector<128x512xf32>, vector<8x512xf32> -> vector<8x512xf32>
    %172 = arith.addf %170, %171 : vector<8x512xf32>
    %173 = vector.extract_strided_slice %172 {offsets = [0, 0], sizes = [8, 384], strides = [1, 1]} : vector<8x512xf32> to vector<8x384xf32>
    %174 = arith.negf %173 : vector<8x384xf32>
    %175 = math.exp %174 : vector<8x384xf32>
    %cst_45 = arith.constant 1.000000e+00 : f32
    %176 = vector.broadcast %cst_45 : f32 to vector<8x384xf32>
    %177 = arith.addf %176, %175 : vector<8x384xf32>
    %178 = arith.divf %176, %177 : vector<8x384xf32>
    %179 = vector.extract_strided_slice %178 {offsets = [0, 0], sizes = [8, 128], strides = [1, 1]} : vector<8x384xf32> to vector<8x128xf32>
    %180 = vector.extract_strided_slice %178 {offsets = [0, 128], sizes = [8, 128], strides = [1, 1]} : vector<8x384xf32> to vector<8x128xf32>
    %181 = vector.extract_strided_slice %178 {offsets = [0, 256], sizes = [8, 128], strides = [1, 1]} : vector<8x384xf32> to vector<8x128xf32>
    %182 = vector.extract_strided_slice %172 {offsets = [0, 384], sizes = [8, 128], strides = [1, 1]} : vector<8x512xf32> to vector<8x128xf32>
    %183 = math.tanh %182 : vector<8x128xf32>
    %184 = arith.mulf %180, %164 : vector<8x128xf32>
    %185 = arith.mulf %179, %183 : vector<8x128xf32>
    %186 = arith.addf %184, %185 : vector<8x128xf32>
    %187 = math.tanh %186 : vector<8x128xf32>
    %188 = arith.mulf %181, %187 : vector<8x128xf32>
    %c8_i32_46 = arith.constant 8 : i32
    %c0_i32_47 = arith.constant 0 : i32
    %189 = arith.cmpi slt, %arg0, %c0_i32_47 : i32
    %190 = arith.extui %189 : i1 to i32
    %c0_i32_48 = arith.constant 0 : i32
    %191 = arith.cmpi ne, %190, %c0_i32_48 : i32
    scf.if %191 {
      %c0_51 = arith.constant 0 : index
      %c0_52 = arith.constant 0 : index
      %195 = vector.load %arg8[%c0_51, %c0_52] : memref<8x128xf32, #tpu.memory_space<vmem>>, vector<8x128xf32>
      tpu.vector_store %arg8[%c0_51, %c0_52], %188 {strides = array<i32>} : memref<8x128xf32, #tpu.memory_space<vmem>>, vector<8x128xf32>,
      %c0_53 = arith.constant 0 : index
      %c0_54 = arith.constant 0 : index
      %196 = vector.load %arg9[%c0_53, %c0_54] : memref<8x128xf32, #tpu.memory_space<vmem>>, vector<8x128xf32>
      tpu.vector_store %arg9[%c0_53, %c0_54], %186 {strides = array<i32>} : memref<8x128xf32, #tpu.memory_space<vmem>>, vector<8x128xf32>,
    } else {
    }
    %c0_i32_49 = arith.constant 0 : i32
    %192 = arith.cmpi eq, %arg0, %c0_i32_49 : i32
    %193 = arith.extui %192 : i1 to i32
    %c0_i32_50 = arith.constant 0 : i32
    %194 = arith.cmpi ne, %193, %c0_i32_50 : i32
    scf.if %194 {
      %c0_51 = arith.constant 0 : index
      %c0_52 = arith.constant 0 : index
      %195 = vector.load %arg5[%c0_51, %c0_52] : memref<128x128xf32, #tpu.memory_space<vmem>>, vector<128x128xf32>
      %cst_53 = arith.constant dense<0.000000e+00> : vector<8x128xf32>
      %196 = tpu.matmul %188, %195, %cst_53 {dimension_numbers = #tpu.dot_dimension_numbers<[1], [0], [0], [1], [0, 0, 1, 1], [], []>} : vector<8x128xf32>, vector<128x128xf32>, vector<8x128xf32> -> vector<8x128xf32>
      %c0_54 = arith.constant 0 : index
      %c0_55 = arith.constant 0 : index
      %197 = vector.load %arg6[%c0_54, %c0_55] : memref<1x128xf32, #tpu.memory_space<vmem>>, vector<1x128xf32>
      %198 = vector.broadcast %197 : vector<1x128xf32> to vector<8x128xf32>
      %199 = arith.addf %196, %198 : vector<8x128xf32>
      %c0_56 = arith.constant 0 : index
      %c0_57 = arith.constant 0 : index
      %200 = vector.load %arg7[%c0_56, %c0_57] : memref<8x128xf32, #tpu.memory_space<vmem>>, vector<8x128xf32>
      tpu.vector_store %arg7[%c0_56, %c0_57], %199 {strides = array<i32>} : memref<8x128xf32, #tpu.memory_space<vmem>>, vector<8x128xf32>,
    } else {
    }
    return
  }
  func.func @transform_0(%arg0: i32) -> (i32, i32) {
    %c0_i32 = arith.constant 0 : i32
    %c0_i32_0 = arith.constant 0 : i32
    return %arg0, %c0_i32 : i32, i32
  }
  func.func @transform_1(%arg0: i32) -> (i32, i32) {
    %c0_i32 = arith.constant 0 : i32
    %c0_i32_0 = arith.constant 0 : i32
    %c0_i32_1 = arith.constant 0 : i32
    return %c0_i32, %c0_i32_0 : i32, i32
  }
  func.func @transform_2(%arg0: i32) -> (i32, i32) {
    %c0_i32 = arith.constant 0 : i32
    %c0_i32_0 = arith.constant 0 : i32
    %c0_i32_1 = arith.constant 0 : i32
    return %c0_i32, %c0_i32_0 : i32, i32
  }
  func.func @transform_3(%arg0: i32) -> (i32, i32) {
    %c0_i32 = arith.constant 0 : i32
    %c0_i32_0 = arith.constant 0 : i32
    %c0_i32_1 = arith.constant 0 : i32
    return %c0_i32, %c0_i32_0 : i32, i32
  }
  func.func @transform_4(%arg0: i32) -> (i32, i32) {
    %c0_i32 = arith.constant 0 : i32
    %c0_i32_0 = arith.constant 0 : i32
    %c0_i32_1 = arith.constant 0 : i32
    return %c0_i32, %c0_i32_0 : i32, i32
  }
  func.func @transform_5(%arg0: i32) -> (i32, i32) {
    %c0_i32 = arith.constant 0 : i32
    %c0_i32_0 = arith.constant 0 : i32
    %c0_i32_1 = arith.constant 0 : i32
    return %c0_i32, %c0_i32_0 : i32, i32
  }
  func.func @transform_6(%arg0: i32) -> (i32, i32) {
    %c0_i32 = arith.constant 0 : i32
    %c0_i32_0 = arith.constant 0 : i32
    %c0_i32_1 = arith.constant 0 : i32
    return %c0_i32, %c0_i32_0 : i32, i32
  }
}

</mosaic_0001>

<bundles_post_ra>
// kernel: lstm_regression.1
= control target key start
LH: loop header
LB: loop body
LE: loop exit
PB: predicated region body
PF: predicated region fallthrough
CT: control target
= control target key end

     0   :  { %v3912_v3 = vmov 0.0   ;;  %vm2249_vm0 = vmmov 0   ;;  %s3905_s1 = inlined_call_operand.vmem [shape: f32[128,512], index: 1, kind: input, shape index: {}]   ;;  %s3906_s0 = inlined_call_operand.vmem [shape: f32[64,128], index: 0, kind: input, shape index: {}]   ;;  %s3907_s2 = inlined_call_operand.vmem [shape: f32[128,512], index: 2, kind: input, shape index: {}]   ;;  %s3908_s3 = inlined_call_operand.vmem [shape: f32[1,512], index: 3, kind: input, shape index: {}]   ;;  %s3909_s4 = inlined_call_operand.vmem [shape: f32[128,128], index: 4, kind: input, shape index: {}]   ;;  %s3910_s5 = inlined_call_operand.vmem [shape: f32[1,128], index: 5, kind: input, shape index: {}]   ;;  %s3911_s6 = inlined_call_operand.vmem [shape: f32[8,128], index: 6, kind: output, shape index: {}]  }
   0x1   :  { %v98_v0 = vld [vmem:[%s3905_s1 + $0x1e8] sm:$0xff]  ;;  %v100_v1 = vld [vmem:[%s3905_s1 + $0x1f8] sm:$0xff]  ;;  %v97_v2 = vld [vmem:[%s3905_s1 + $0x1e0] sm:$0xff]  ;;  %187 = vmatprep.mubr.f32.mxu0 %v3912_v3  ;;  %300 = vmatprep.mubr.f32.mxu1 %v3912_v3 }
   0x2   :  { %123 = vmatprep.subr.mxu0 %v98_v0  ;;  %236 = vmatprep.subr.mxu1 %v100_v1  ;;  %v99_v4 = vld [vmem:[%s3905_s1 + $0x1f0] sm:$0xff]  ;;  %v94_v5 = vld [vmem:[%s3905_s1 + $0x1c8] sm:$0xff]  ;;  %v96_v6 = vld [vmem:[%s3905_s1 + $0x1d8] sm:$0xff] }
   0x3   :  { %124 = vmatpush1.msra.mxu0 %v97_v2  ;;  %237 = vmatpush1.msra.mxu1 %v99_v4  ;;  %v93_v7 = vld [vmem:[%s3905_s1 + $0x1c0] sm:$0xff]  ;;  %v95_v8 = vld [vmem:[%s3905_s1 + $0x1d0] sm:$0xff]  ;;  %v90_v9 = vld [vmem:[%s3905_s1 + $0x1a8] sm:$0xff] }
   0x4   :  { %125 = vmatprep.subr.mxu0 %v94_v5  ;;  %238 = vmatprep.subr.mxu1 %v96_v6  ;;  %v92_v10 = vld [vmem:[%s3905_s1 + $0x1b8] sm:$0xff]  ;;  %v89_v11 = vld [vmem:[%s3905_s1 + $0x1a0] sm:$0xff]  ;;  %v91_v12 = vld [vmem:[%s3905_s1 + $0x1b0] sm:$0xff] }
   0x5   :  { %126 = vmatpush1.msra.mxu0 %v93_v7  ;;  %239 = vmatpush1.msra.mxu1 %v95_v8  ;;  %v86_v13 = vld [vmem:[%s3905_s1 + $0x188] sm:$0xff]  ;;  %v88_v14 = vld [vmem:[%s3905_s1 + $0x198] sm:$0xff]  ;;  %v85_v15 = vld [vmem:[%s3905_s1 + $0x180] sm:$0xff] }
   0x6   :  { %127 = vmatprep.subr.mxu0 %v90_v9  ;;  %240 = vmatprep.subr.mxu1 %v92_v10  ;;  %v87_v16 = vld [vmem:[%s3905_s1 + $0x190] sm:$0xff]  ;;  %v82_v17 = vld [vmem:[%s3905_s1 + $0x168] sm:$0xff]  ;;  %v84_v18 = vld [vmem:[%s3905_s1 + $0x178] sm:$0xff] }
   0x7   :  { %128 = vmatpush1.msra.mxu0 %v89_v11  ;;  %241 = vmatpush1.msra.mxu1 %v91_v12  ;;  %v81_v19 = vld [vmem:[%s3905_s1 + $0x160] sm:$0xff]  ;;  %v83_v20 = vld [vmem:[%s3905_s1 + $0x170] sm:$0xff]  ;;  %v78_v21 = vld [vmem:[%s3905_s1 + $0x148] sm:$0xff] }
   0x8   :  { %129 = vmatprep.subr.mxu0 %v86_v13  ;;  %242 = vmatprep.subr.mxu1 %v88_v14  ;;  %v80_v22 = vld [vmem:[%s3905_s1 + $0x158] sm:$0xff]  ;;  %v77_v23 = vld [vmem:[%s3905_s1 + $0x140] sm:$0xff]  ;;  %v79_v24 = vld [vmem:[%s3905_s1 + $0x150] sm:$0xff] }
   0x9   :  { %130 = vmatpush1.msra.mxu0 %v85_v15  ;;  %243 = vmatpush1.msra.mxu1 %v87_v16  ;;  %v74_v25 = vld [vmem:[%s3905_s1 + $0x128] sm:$0xff]  ;;  %v76_v26 = vld [vmem:[%s3905_s1 + $0x138] sm:$0xff]  ;;  %v73_v27 = vld [vmem:[%s3905_s1 + $0x120] sm:$0xff] }
   0xa   :  { %131 = vmatprep.subr.mxu0 %v82_v17  ;;  %244 = vmatprep.subr.mxu1 %v84_v18  ;;  %v75_v28 = vld [vmem:[%s3905_s1 + $0x130] sm:$0xff]  ;;  %v70_v29 = vld [vmem:[%s3905_s1 + $0x108] sm:$0xff]  ;;  %v72_v30 = vld [vmem:[%s3905_s1 + $0x118] sm:$0xff] }
   0xb   :  { %132 = vmatpush1.msra.mxu0 %v81_v19  ;;  %245 = vmatpush1.msra.mxu1 %v83_v20  ;;  %v69_v31 = vld [vmem:[%s3905_s1 + $0x100] sm:$0xff]  ;;  %v71_v32 = vld [vmem:[%s3905_s1 + $0x110] sm:$0xff]  ;;  %v66_v33 = vld [vmem:[%s3905_s1 + $0xe8] sm:$0xff] }
   0xc   :  { %133 = vmatprep.subr.mxu0 %v78_v21  ;;  %246 = vmatprep.subr.mxu1 %v80_v22  ;;  %v68_v34 = vld [vmem:[%s3905_s1 + $0xf8] sm:$0xff]  ;;  %v65_v35 = vld [vmem:[%s3905_s1 + $0xe0] sm:$0xff]  ;;  %v67_v36 = vld [vmem:[%s3905_s1 + $0xf0] sm:$0xff] }
   0xd   :  { %134 = vmatpush1.msra.mxu0 %v77_v23  ;;  %247 = vmatpush1.msra.mxu1 %v79_v24  ;;  %v62_v37 = vld [vmem:[%s3905_s1 + $0xc8] sm:$0xff]  ;;  %v64_v38 = vld [vmem:[%s3905_s1 + $0xd8] sm:$0xff]  ;;  %v61_v39 = vld [vmem:[%s3905_s1 + $0xc0] sm:$0xff] }
   0xe   :  { %135 = vmatprep.subr.mxu0 %v74_v25  ;;  %248 = vmatprep.subr.mxu1 %v76_v26  ;;  %v63_v40 = vld [vmem:[%s3905_s1 + $0xd0] sm:$0xff]  ;;  %v58_v41 = vld [vmem:[%s3905_s1 + $0xa8] sm:$0xff]  ;;  %v60_v42 = vld [vmem:[%s3905_s1 + $0xb8] sm:$0xff] }
   0xf   :  { %136 = vmatpush1.msra.mxu0 %v73_v27  ;;  %249 = vmatpush1.msra.mxu1 %v75_v28  ;;  %v57_v43 = vld [vmem:[%s3905_s1 + $0xa0] sm:$0xff]  ;;  %v59_v44 = vld [vmem:[%s3905_s1 + $0xb0] sm:$0xff]  ;;  %v54_v45 = vld [vmem:[%s3905_s1 + $0x88] sm:$0xff] }
  0x10   :  { %137 = vmatprep.subr.mxu0 %v70_v29  ;;  %250 = vmatprep.subr.mxu1 %v72_v30  ;;  %v56_v46 = vld [vmem:[%s3905_s1 + $0x98] sm:$0xff]  ;;  %v53_v47 = vld [vmem:[%s3905_s1 + $0x80] sm:$0xff]  ;;  %v55_v48 = vld [vmem:[%s3905_s1 + $0x90] sm:$0xff] }
  0x11   :  { %138 = vmatpush1.msra.mxu0 %v69_v31  ;;  %251 = vmatpush1.msra.mxu1 %v71_v32  ;;  %v50_v49 = vld [vmem:[%s3905_s1 + $0x68] sm:$0xff]  ;;  %v52_v50 = vld [vmem:[%s3905_s1 + $0x78] sm:$0xff]  ;;  %v49_v51 = vld [vmem:[%s3905_s1 + $0x60] sm:$0xff] }
  0x12   :  { %139 = vmatprep.subr.mxu0 %v66_v33  ;;  %252 = vmatprep.subr.mxu1 %v68_v34  ;;  %v51_v52 = vld [vmem:[%s3905_s1 + $0x70] sm:$0xff]  ;;  %v46_v53 = vld [vmem:[%s3905_s1 + $0x48] sm:$0xff]  ;;  %v48_v54 = vld [vmem:[%s3905_s1 + $0x58] sm:$0xff] }
  0x13   :  { %140 = vmatpush1.msra.mxu0 %v65_v35  ;;  %253 = vmatpush1.msra.mxu1 %v67_v36  ;;  %v45_v55 = vld [vmem:[%s3905_s1 + $0x40] sm:$0xff]  ;;  %v47_v56 = vld [vmem:[%s3905_s1 + $0x50] sm:$0xff]  ;;  %v42_v57 = vld [vmem:[%s3905_s1 + $0x28] sm:$0xff] }
  0x14   :  { %141 = vmatprep.subr.mxu0 %v62_v37  ;;  %254 = vmatprep.subr.mxu1 %v64_v38  ;;  %v44_v58 = vld [vmem:[%s3905_s1 + $0x38] sm:$0xff]  ;;  %v41_v59 = vld [vmem:[%s3905_s1 + $0x20] sm:$0xff]  ;;  %v43_v60 = vld [vmem:[%s3905_s1 + $0x30] sm:$0xff] }
  0x15   :  { %142 = vmatpush1.msra.mxu0 %v61_v39  ;;  %255 = vmatpush1.msra.mxu1 %v63_v40  ;;  %v38_v61 = vld [vmem:[%s3905_s1 + $0x8] sm:$0xff]  ;;  %v40_v62 = vld [vmem:[%s3905_s1 + $0x18] sm:$0xff]  ;;  %v37_v63 = vld [vmem:[%s3905_s1] sm:$0xff] }
  0x16   :  { %143 = vmatprep.subr.mxu0 %v58_v41  ;;  %256 = vmatprep.subr.mxu1 %v60_v42  ;;  %v39_v0 = vld [vmem:[%s3905_s1 + $0x10] sm:$0xff]  ;;  %v29_v1 = vld [vmem:[%s3906_s0] sm:$0xff]  ;;  %v2485_v2 = vld [vmem:[%s3907_s2 + $0x1e8] sm:$0xff] }
  0x17   :  { %144 = vmatpush1.msra.mxu0 %v57_v43  ;;  %257 = vmatpush1.msra.mxu1 %v59_v44  ;;  %4000 = vst [vmem:[#allocation5_spill] sm:$0xff] %v2485_v2  ;;  %v2490_v4 = vld [vmem:[%s3907_s2 + $0x1f8] sm:$0xff]  ;;  %v2495_v5 = vld [vmem:[%s3907_s2 + $0x1e0] sm:$0xff]  ;;  %v2500_v6 = vld [vmem:[%s3907_s2 + $0x1f0] sm:$0xff] }
  0x18   :  { %145 = vmatprep.subr.mxu0 %v54_v45  ;;  %258 = vmatprep.subr.mxu1 %v56_v46  ;;  %4001 = vst [vmem:[#allocation6_spill] sm:$0xff] %v2490_v4  ;;  %v2505_v7 = vld [vmem:[%s3907_s2 + $0x1c8] sm:$0xff]  ;;  %v2510_v8 = vld [vmem:[%s3907_s2 + $0x1d8] sm:$0xff]  ;;  %v2519_v9 = vld [vmem:[%s3907_s2 + $0x1c0] sm:$0xff] }
  0x19   :  { %146 = vmatpush1.msra.mxu0 %v53_v47  ;;  %259 = vmatpush1.msra.mxu1 %v55_v48  ;;  %v2524_v10 = vld [vmem:[%s3907_s2 + $0x1d0] sm:$0xff]  ;;  %v30_v11 = vld [vmem:[%s3906_s0 + $0x8] sm:$0xff]  ;;  %v2541_v13 = vld [vmem:[%s3907_s2 + $0x1b8] sm:$0xff] }
  0x1a   :  { %147 = vmatprep.subr.mxu0 %v50_v49  ;;  %260 = vmatprep.subr.mxu1 %v52_v50  ;;  %v2536_v12 = vld [vmem:[%s3907_s2 + $0x1a8] sm:$0xff]  ;;  %v2548_v14 = vld [vmem:[%s3907_s2 + $0x1a0] sm:$0xff]  ;;  %v2553_v15 = vld [vmem:[%s3907_s2 + $0x1b0] sm:$0xff] }
  0x1b   :  { %148 = vmatpush1.msra.mxu0 %v49_v51  ;;  %261 = vmatpush1.msra.mxu1 %v51_v52  ;;  %v2558_v16 = vld [vmem:[%s3907_s2 + $0x188] sm:$0xff]  ;;  %v2563_v17 = vld [vmem:[%s3907_s2 + $0x198] sm:$0xff]  ;;  %v2572_v18 = vld [vmem:[%s3907_s2 + $0x180] sm:$0xff] }
  0x1c   :  { %149 = vmatprep.subr.mxu0 %v46_v53  ;;  %262 = vmatprep.subr.mxu1 %v48_v54  ;;  %v2577_v19 = vld [vmem:[%s3907_s2 + $0x190] sm:$0xff]  ;;  %v2589_v21 = vld [vmem:[%s3907_s2 + $0x168] sm:$0xff]  ;;  %v2594_v22 = vld [vmem:[%s3907_s2 + $0x178] sm:$0xff] }
  0x1d   :  { %150 = vmatpush1.msra.mxu0 %v45_v55  ;;  %263 = vmatpush1.msra.mxu1 %v47_v56  ;;  %v31_v20 = vld [vmem:[%s3906_s0 + $0x10] sm:$0xff]  ;;  %v2601_v23 = vld [vmem:[%s3907_s2 + $0x160] sm:$0xff]  ;;  %v2611_v25 = vld [vmem:[%s3907_s2 + $0x148] sm:$0xff] }
  0x1e   :  { %151 = vmatprep.subr.mxu0 %v42_v57  ;;  %264 = vmatprep.subr.mxu1 %v44_v58  ;;  %v2606_v24 = vld [vmem:[%s3907_s2 + $0x170] sm:$0xff]  ;;  %v2616_v26 = vld [vmem:[%s3907_s2 + $0x158] sm:$0xff]  ;;  %v2625_v27 = vld [vmem:[%s3907_s2 + $0x140] sm:$0xff] }
  0x1f   :  { %152 = vmatpush1.msra.mxu0 %v41_v59  ;;  %265 = vmatpush1.msra.mxu1 %v43_v60  ;;  %v2630_v28 = vld [vmem:[%s3907_s2 + $0x150] sm:$0xff]  ;;  %v32_v29 = vld [vmem:[%s3906_s0 + $0x18] sm:$0xff]  ;;  %v2642_v30 = vld [vmem:[%s3907_s2 + $0x128] sm:$0xff] }
  0x20   :  { %153 = vmatprep.subr.mxu0 %v38_v61  ;;  %266 = vmatprep.subr.mxu1 %v40_v62  ;;  %v2647_v31 = vld [vmem:[%s3907_s2 + $0x138] sm:$0xff]  ;;  %v2654_v32 = vld [vmem:[%s3907_s2 + $0x120] sm:$0xff]  ;;  %v2659_v33 = vld [vmem:[%s3907_s2 + $0x130] sm:$0xff] }
  0x21   :  { %154 = vmatpush1.msra.mxu0 %v37_v63  ;;  %267 = vmatpush1.msra.mxu1 %v39_v0  ;;  %v2664_v34 = vld [vmem:[%s3907_s2 + $0x108] sm:$0xff]  ;;  %v2669_v35 = vld [vmem:[%s3907_s2 + $0x118] sm:$0xff]  ;;  %v2678_v36 = vld [vmem:[%s3907_s2 + $0x100] sm:$0xff] }
  0x22   :  { %188 = vmatmul.mubr.f32.vlgmr.msra.gmra.mxu0 %v29_v1  ;;  %301 = vmatmul.mubr.f32.vlgmr.msra.gmra.mxu1 %v29_v1  ;;  %v2683_v37 = vld [vmem:[%s3907_s2 + $0x110] sm:$0xff]  ;;  %v33_v38 = vld [vmem:[%s3906_s0 + $0x20] sm:$0xff]  ;;  %v2695_v39 = vld [vmem:[%s3907_s2 + $0xe8] sm:$0xff] }
  0x23   :  { %454 = vmatprep.subr.mxu0 %v2485_v2  ;;  %525 = vmatprep.subr.mxu1 %v2490_v4  ;;  %v2700_v40 = vld [vmem:[%s3907_s2 + $0xf8] sm:$0xff]  ;;  %v2707_v41 = vld [vmem:[%s3907_s2 + $0xe0] sm:$0xff]  ;;  %v2712_v42 = vld [vmem:[%s3907_s2 + $0xf0] sm:$0xff] }
  0x24   :  { %455 = vmatpush1.msra.mxu0 %v2495_v5  ;;  %526 = vmatpush1.msra.mxu1 %v2500_v6  ;;  %v2717_v43 = vld [vmem:[%s3907_s2 + $0xc8] sm:$0xff]  ;;  %v2722_v44 = vld [vmem:[%s3907_s2 + $0xd8] sm:$0xff]  ;;  %v2731_v45 = vld [vmem:[%s3907_s2 + $0xc0] sm:$0xff] }
  0x25   :  { %456 = vmatprep.subr.mxu0 %v2505_v7  ;;  %527 = vmatprep.subr.mxu1 %v2510_v8  ;;  %v2736_v46 = vld [vmem:[%s3907_s2 + $0xd0] sm:$0xff]  ;;  %v34_v47 = vld [vmem:[%s3906_s0 + $0x28] sm:$0xff]  ;;  %v2753_v49 = vld [vmem:[%s3907_s2 + $0xb8] sm:$0xff] }
  0x26   :  { %193 = vmatprep.mubr.f32.mxu0 %v3912_v3  ;;  %306 = vmatprep.mubr.f32.mxu1 %v3912_v3  ;;  %v2748_v48 = vld [vmem:[%s3907_s2 + $0xa8] sm:$0xff]  ;;  %v2760_v50 = vld [vmem:[%s3907_s2 + $0xa0] sm:$0xff]  ;;  %v2765_v51 = vld [vmem:[%s3907_s2 + $0xb0] sm:$0xff] }
  0x27   :  { %457 = vmatpush1.msra.mxu0 %v2519_v9  ;;  %528 = vmatpush1.msra.mxu1 %v2524_v10  ;;  %v2770_v52 = vld [vmem:[%s3907_s2 + $0x88] sm:$0xff]  ;;  %v2775_v53 = vld [vmem:[%s3907_s2 + $0x98] sm:$0xff]  ;;  %v2784_v54 = vld [vmem:[%s3907_s2 + $0x80] sm:$0xff] }
  0x28   :  { %194 = vmatmul.mubr.f32.gmra.mxu0 %v30_v11  ;;  %307 = vmatmul.mubr.f32.gmra.mxu1 %v30_v11  ;;  %4002 = vst [vmem:[#allocation7_spill] sm:$0xff] %v2770_v52  ;;  %4003 = vst [vmem:[#allocation8_spill] sm:$0xff] %v2775_v53  ;;  %v2789_v55 = vld [vmem:[%s3907_s2 + $0x90] sm:$0xff]  ;;  %v2801_v57 = vld [vmem:[%s3907_s2 + $0x68] sm:$0xff] }
  0x29   :  { %458 = vmatprep.subr.mxu0 %v2536_v12  ;;  %529 = vmatprep.subr.mxu1 %v2541_v13  ;;  %4004 = vst [vmem:[#allocation9_spill] sm:$0xff] %v2784_v54  ;;  %4005 = vst [vmem:[#allocation10_spill] sm:$0xff] %v2789_v55  ;;  %v35_v56 = vld [vmem:[%s3906_s0 + $0x30] sm:$0xff]  ;;  %v2806_v58 = vld [vmem:[%s3907_s2 + $0x78] sm:$0xff] }
  0x2a   :  { %459 = vmatpush1.msra.mxu0 %v2548_v14  ;;  %530 = vmatpush1.msra.mxu1 %v2553_v15  ;;  %4006 = vst [vmem:[#allocation11_spill] sm:$0xff] %v2801_v57  ;;  %4007 = vst [vmem:[#allocation12_spill] sm:$0xff] %v2806_v58  ;;  %v2813_v59 = vld [vmem:[%s3907_s2 + $0x60] sm:$0xff]  ;;  %v2818_v60 = vld [vmem:[%s3907_s2 + $0x70] sm:$0xff] }
  0x2b   :  { %460 = vmatprep.subr.mxu0 %v2558_v16  ;;  %531 = vmatprep.subr.mxu1 %v2563_v17  ;;  %4008 = vst [vmem:[#allocation13_spill] sm:$0xff] %v2813_v59  ;;  %4009 = vst [vmem:[#allocation14_spill] sm:$0xff] %v2818_v60  ;;  %v2823_v61 = vld [vmem:[%s3907_s2 + $0x48] sm:$0xff]  ;;  %v2828_v62 = vld [vmem:[%s3907_s2 + $0x58] sm:$0xff] }
  0x2c   :  { %199 = vmatprep.mubr.f32.mxu0 %v3912_v3  ;;  %312 = vmatprep.mubr.f32.mxu1 %v3912_v3  ;;  %4010 = vst [vmem:[#allocation15_spill] sm:$0xff] %v2823_v61  ;;  %4011 = vst [vmem:[#allocation16_spill] sm:$0xff] %v2828_v62  ;;  %v2837_v63 = vld [vmem:[%s3907_s2 + $0x40] sm:$0xff]  ;;  %v2842_v0 = vld [vmem:[%s3907_s2 + $0x50] sm:$0xff] }
  0x2d   :  { %461 = vmatpush1.msra.mxu0 %v2572_v18  ;;  %532 = vmatpush1.msra.mxu1 %v2577_v19  ;;  %4012 = vst [vmem:[#allocation17_spill] sm:$0xff] %v2837_v63  ;;  %4013 = vst [vmem:[#allocation18_spill] sm:$0xff] %v2842_v0  ;;  %v36_v1 = vld [vmem:[%s3906_s0 + $0x38] sm:$0xff]  ;;  %v2854_v11 = vld [vmem:[%s3907_s2 + $0x28] sm:$0xff] }
  0x2e   :  { %200 = vmatmul.mubr.f32.gmra.mxu0 %v31_v20  ;;  %313 = vmatmul.mubr.f32.gmra.mxu1 %v31_v20  ;;  %4014 = vst [vmem:[#allocation19_spill] sm:$0xff] %v2854_v11  ;;  %v2859_v20 = vld [vmem:[%s3907_s2 + $0x38] sm:$0xff] }
  0x2f   :  { %462 = vmatprep.subr.mxu0 %v2589_v21  ;;  %533 = vmatprep.subr.mxu1 %v2594_v22  ;;  %4015 = vst [vmem:[#allocation20_spill] sm:$0xff] %v2859_v20 }
  0x30   :  { %463 = vmatpush1.msra.mxu0 %v2601_v23  ;;  %534 = vmatpush1.msra.mxu1 %v2606_v24 }
  0x31   :  { %464 = vmatprep.subr.mxu0 %v2611_v25  ;;  %535 = vmatprep.subr.mxu1 %v2616_v26 }
  0x32   :  { %205 = vmatprep.mubr.f32.mxu0 %v3912_v3  ;;  %318 = vmatprep.mubr.f32.mxu1 %v3912_v3 }
  0x33   :  { %465 = vmatpush1.msra.mxu0 %v2625_v27  ;;  %536 = vmatpush1.msra.mxu1 %v2630_v28 }
  0x34   :  { %206 = vmatmul.mubr.f32.gmra.mxu0 %v32_v29  ;;  %319 = vmatmul.mubr.f32.gmra.mxu1 %v32_v29  ;;  %v2866_v29 = vld [vmem:[%s3907_s2 + $0x20] sm:$0xff] }
  0x35   :  { %466 = vmatprep.subr.mxu0 %v2642_v30  ;;  %537 = vmatprep.subr.mxu1 %v2647_v31  ;;  %4016 = vst [vmem:[#allocation21_spill] sm:$0xff] %v2866_v29 }
  0x36   :  { %467 = vmatpush1.msra.mxu0 %v2654_v32  ;;  %538 = vmatpush1.msra.mxu1 %v2659_v33 }
  0x37   :  { %468 = vmatprep.subr.mxu0 %v2664_v34  ;;  %539 = vmatprep.subr.mxu1 %v2669_v35 }
  0x38   :  { %211 = vmatprep.mubr.f32.mxu0 %v3912_v3  ;;  %324 = vmatprep.mubr.f32.mxu1 %v3912_v3 }
  0x39   :  { %469 = vmatpush1.msra.mxu0 %v2678_v36  ;;  %540 = vmatpush1.msra.mxu1 %v2683_v37 }
  0x3a   :  { %212 = vmatmul.mubr.f32.gmra.mxu0 %v33_v38  ;;  %325 = vmatmul.mubr.f32.gmra.mxu1 %v33_v38  ;;  %v2871_v38 = vld [vmem:[%s3907_s2 + $0x30] sm:$0xff] }
  0x3b   :  { %470 = vmatprep.subr.mxu0 %v2695_v39  ;;  %541 = vmatprep.subr.mxu1 %v2700_v40  ;;  %4017 = vst [vmem:[#allocation22_spill] sm:$0xff] %v2871_v38 }
  0x3c   :  { %471 = vmatpush1.msra.mxu0 %v2707_v41  ;;  %542 = vmatpush1.msra.mxu1 %v2712_v42 }
  0x3d   :  { %472 = vmatprep.subr.mxu0 %v2717_v43  ;;  %543 = vmatprep.subr.mxu1 %v2722_v44 }
  0x3e   :  { %217 = vmatprep.mubr.f32.mxu0 %v3912_v3  ;;  %330 = vmatprep.mubr.f32.mxu1 %v3912_v3 }
  0x3f   :  { %473 = vmatpush1.msra.mxu0 %v2731_v45  ;;  %544 = vmatpush1.msra.mxu1 %v2736_v46 }
  0x40   :  { %218 = vmatmul.mubr.f32.gmra.mxu0 %v34_v47  ;;  %331 = vmatmul.mubr.f32.gmra.mxu1 %v34_v47  ;;  %v2876_v47 = vld [vmem:[%s3907_s2 + $0x8] sm:$0xff] }
  0x41   :  { %474 = vmatprep.subr.mxu0 %v2748_v48  ;;  %545 = vmatprep.subr.mxu1 %v2753_v49  ;;  %4018 = vst [vmem:[#allocation23_spill] sm:$0xff] %v2876_v47 }
  0x42   :  { %475 = vmatpush1.msra.mxu0 %v2760_v50  ;;  %546 = vmatpush1.msra.mxu1 %v2765_v51 }
  0x43   :  { %476 = vmatprep.subr.mxu0 %v2770_v52  ;;  %547 = vmatprep.subr.mxu1 %v2775_v53 }
  0x44   :  { %223 = vmatprep.mubr.f32.mxu0 %v3912_v3  ;;  %336 = vmatprep.mubr.f32.mxu1 %v3912_v3 }
  0x45   :  { %477 = vmatpush1.msra.mxu0 %v2784_v54  ;;  %548 = vmatpush1.msra.mxu1 %v2789_v55 }
  0x46   :  { %224 = vmatmul.mubr.f32.gmra.mxu0 %v35_v56  ;;  %337 = vmatmul.mubr.f32.gmra.mxu1 %v35_v56  ;;  %v2881_v56 = vld [vmem:[%s3907_s2 + $0x18] sm:$0xff] }
  0x47   :  { %478 = vmatprep.subr.mxu0 %v2801_v57  ;;  %549 = vmatprep.subr.mxu1 %v2806_v58  ;;  %4019 = vst [vmem:[#allocation24_spill] sm:$0xff] %v2881_v56 }
  0x48   :  { %479 = vmatpush1.msra.mxu0 %v2813_v59  ;;  %550 = vmatpush1.msra.mxu1 %v2818_v60 }
  0x49   :  { %480 = vmatprep.subr.mxu0 %v2823_v61  ;;  %551 = vmatprep.subr.mxu1 %v2828_v62 }
  0x4a   :  { %229 = vmatprep.mubr.f32.mxu0 %v3912_v3  ;;  %342 = vmatprep.mubr.f32.mxu1 %v3912_v3  ;;  %v2888_v3 = vld [vmem:[%s3907_s2] sm:$0xff] }
  0x4b   :  { %481 = vmatpush1.msra.mxu0 %v2837_v63  ;;  %552 = vmatpush1.msra.mxu1 %v2842_v0  ;;  %4020 = vst [vmem:[#allocation25_spill] sm:$0xff] %v2888_v3 }
  0x4c   :  { %230 = vmatmul.mubr.f32.gmra.mxu0 %v36_v1  ;;  %343 = vmatmul.mubr.f32.gmra.mxu1 %v36_v1  ;;  %v2895_v1 = vld [vmem:[%s3907_s2 + $0x10] sm:$0xff] }
  0x4d   :  { %482 = vmatprep.subr.mxu0 %v2854_v11  ;;  %553 = vmatprep.subr.mxu1 %v2859_v20  ;;  %4021 = vst [vmem:[#allocation26_spill] sm:$0xff] %v2895_v1  ;;  %v4022_v20 = vmov 0.0  }
  0x4e   :  { %483 = vmatpush1.msra.mxu0 %v2866_v29  ;;  %554 = vmatpush1.msra.mxu1 %v2871_v38 }
  0x4f   :  { %484 = vmatprep.subr.mxu0 %v2876_v47  ;;  %555 = vmatprep.subr.mxu1 %v2881_v56 }
  0x50   :  { %485 = vmatpush1.msra.mxu0 %v2888_v3  ;;  %518 = vmatprep.mubr.f32.mxu0 %v4022_v20 }
  0x51   :  { %556 = vmatpush1.msra.mxu1 %v2895_v1  ;;  %589 = vmatprep.mubr.f32.mxu1 %v4022_v20 }
  0x52   :  { %519 = vmatmul.mubr.f32.vlgmr.msra.gmra.mxu0 %v4022_v20  ;;  %590 = vmatmul.mubr.f32.vlgmr.msra.gmra.mxu1 %v4022_v20 }
  0x53   :  { %631 = vmatprep.subr.mxu0 %v2485_v2  ;;  %702 = vmatprep.subr.mxu1 %v2490_v4 }
  0x54   :  { %632 = vmatpush1.msra.mxu0 %v2495_v5  ;;  %703 = vmatpush1.msra.mxu1 %v2500_v6 }
  0x55   :  { %633 = vmatprep.subr.mxu0 %v2505_v7  ;;  %704 = vmatprep.subr.mxu1 %v2510_v8 }
  0x56   :  { %634 = vmatpush1.msra.mxu0 %v2519_v9  ;;  %705 = vmatpush1.msra.mxu1 %v2524_v10 }
  0x57   :  { %635 = vmatprep.subr.mxu0 %v2536_v12  ;;  %706 = vmatprep.subr.mxu1 %v2541_v13 }
  0x58   :  { %636 = vmatpush1.msra.mxu0 %v2548_v14  ;;  %707 = vmatpush1.msra.mxu1 %v2553_v15 }
  0x59   :  { %637 = vmatprep.subr.mxu0 %v2558_v16  ;;  %708 = vmatprep.subr.mxu1 %v2563_v17 }
  0x5a   :  { %638 = vmatpush1.msra.mxu0 %v2572_v18  ;;  %709 = vmatpush1.msra.mxu1 %v2577_v19 }
  0x5b   :  { %639 = vmatprep.subr.mxu0 %v2589_v21  ;;  %710 = vmatprep.subr.mxu1 %v2594_v22 }
  0x5c   :  { %640 = vmatpush1.msra.mxu0 %v2601_v23  ;;  %711 = vmatpush1.msra.mxu1 %v2606_v24 }
  0x5d   :  { %641 = vmatprep.subr.mxu0 %v2611_v25  ;;  %712 = vmatprep.subr.mxu1 %v2616_v26 }
  0x5e   :  { %642 = vmatpush1.msra.mxu0 %v2625_v27  ;;  %713 = vmatpush1.msra.mxu1 %v2630_v28 }
  0x5f   :  { %643 = vmatprep.subr.mxu0 %v2642_v30  ;;  %714 = vmatprep.subr.mxu1 %v2647_v31 }
  0x60   :  { %644 = vmatpush1.msra.mxu0 %v2654_v32  ;;  %715 = vmatpush1.msra.mxu1 %v2659_v33 }
  0x61   :  { %645 = vmatprep.subr.mxu0 %v2664_v34  ;;  %716 = vmatprep.subr.mxu1 %v2669_v35 }
  0x62   :  { %646 = vmatpush1.msra.mxu0 %v2678_v36  ;;  %717 = vmatpush1.msra.mxu1 %v2683_v37 }
  0x63   :  { %647 = vmatprep.subr.mxu0 %v2695_v39  ;;  %718 = vmatprep.subr.mxu1 %v2700_v40 }
  0x64   :  { %648 = vmatpush1.msra.mxu0 %v2707_v41  ;;  %719 = vmatpush1.msra.mxu1 %v2712_v42 }
  0x65   :  { %649 = vmatprep.subr.mxu0 %v2717_v43  ;;  %720 = vmatprep.subr.mxu1 %v2722_v44 }
  0x66   :  { %650 = vmatpush1.msra.mxu0 %v2731_v45  ;;  %721 = vmatpush1.msra.mxu1 %v2736_v46 }
  0x67   :  { %651 = vmatprep.subr.mxu0 %v2748_v48  ;;  %722 = vmatprep.subr.mxu1 %v2753_v49 }
  0x68   :  { %652 = vmatpush1.msra.mxu0 %v2760_v50  ;;  %723 = vmatpush1.msra.mxu1 %v2765_v51 }
  0x69   :  { %653 = vmatprep.subr.mxu0 %v2770_v52  ;;  %724 = vmatprep.subr.mxu1 %v2775_v53 }
  0x6a   :  { %654 = vmatpush1.msra.mxu0 %v2784_v54  ;;  %725 = vmatpush1.msra.mxu1 %v2789_v55  ;;  %v4023_v54 = vld [vmem:[#allocation20_spill] sm:$0xff] }
  0x6b   :  { %655 = vmatprep.subr.mxu0 %v2801_v57  ;;  %726 = vmatprep.subr.mxu1 %v2806_v58 }
  0x6c   :  { %656 = vmatpush1.msra.mxu0 %v2813_v59  ;;  %727 = vmatpush1.msra.mxu1 %v2818_v60 }
  0x6d   :  { %657 = vmatprep.subr.mxu0 %v2823_v61  ;;  %728 = vmatprep.subr.mxu1 %v2828_v62 }
  0x6e   :  { %658 = vmatpush1.msra.mxu0 %v2837_v63  ;;  %729 = vmatpush1.msra.mxu1 %v2842_v0 }
  0x6f   :  { %659 = vmatprep.subr.mxu0 %v2854_v11  ;;  %730 = vmatprep.subr.mxu1 %v4023_v54  ;;  %v103_v54 = vlaneseq }
  0x70   :  { %660 = vmatpush1.msra.mxu0 %v2866_v29  ;;  %731 = vmatpush1.msra.mxu1 %v2871_v38 }
  0x71   :  { %661 = vmatprep.subr.mxu0 %v2876_v47  ;;  %732 = vmatprep.subr.mxu1 %v2881_v56  ;;  %v104_v29 = vshrl.u32 %v103_v54, 7 }
  0x72   :  { %662 = vmatpush1.msra.mxu0 %v2888_v3  ;;  %695 = vmatprep.mubr.f32.mxu0 %v4022_v20  ;;  %v101_v3 = vld [vmem:[%s3908_s3] sm:$0xf] }
  0x73   :  { %733 = vmatpush1.msra.mxu1 %v2895_v1  ;;  %766 = vmatprep.mubr.f32.mxu1 %v4022_v20  ;;  %v105_v47 = vsub.s32 0, %v104_v29  ;;  %v113_v56 = vsub.s32 2, %v104_v29  ;;  %v109_v20 = vsub.s32 1, %v104_v29 }
  0x74   :  { %808 = vmatprep.subr.mxu0 %v2485_v2  ;;  %879 = vmatprep.subr.mxu1 %v2490_v4  ;;  %v117_v2 = vsub.s32 3, %v104_v29 }
  0x75   :  { %v106_v63 = vrot.slane %v101_v3, %v105_v47  ;;  %v2984_v4 = vrot.slane %v101_v3, %v113_v56  ;;  %v110_v61 = vrot.slane %v101_v3, %v109_v20 }
  0x76   :  { %v2986_v60 = vrot.slane %v101_v3, %v117_v2 }
  0xe2   :  { %v2973_v11 = vpop.f32.mrf.mxu0  ;;  %v2975_v38 = vpop.f32.mrf.mxu1 }
  0xe4   :  { %v2980_v0 = vpop.f32.mrf.mxu0  ;;  %v2982_v1 = vpop.f32.mrf.mxu1 }
  0xe8   :  { %v195_v54 = vpop.f32.mrf.mxu0  ;;  %v308_v62 = vpop.f32.mrf.mxu1 }
  0xe9   :  { %v2988_v59 = vadd.f32 %v195_v54, %v106_v63  ;;  %v2991_v58 = vadd.f32 %v308_v62, %v2984_v4 }
  0xea   :  { %v197_v57 = vpop.f32.mrf.mxu0  ;;  %v310_v55 = vpop.f32.mrf.mxu1 }
  0xeb   :  { %4024 = vst [vmem:[#allocation27_spill] sm:$0xff] %v2988_v59  ;;  %4025 = vst [vmem:[#allocation28_spill] sm:$0xff] %v2991_v58  ;;  %v2993_v53 = vadd.f32 %v197_v57, %v110_v61  ;;  %v2996_v52 = vadd.f32 %v310_v55, %v2986_v60 }
  0xed   :  { %4026 = vst [vmem:[#allocation29_spill] sm:$0xff] %v2993_v53  ;;  %4027 = vst [vmem:[#allocation30_spill] sm:$0xff] %v2996_v52 }
  0xee   :  { %v201_v29 = vpop.f32.mrf.mxu0  ;;  %v314_v47 = vpop.f32.mrf.mxu1 }
  0xef   :  { %v2998_v56 = vadd.f32 %v201_v29, %v106_v63  ;;  %v3001_v20 = vadd.f32 %v314_v47, %v2984_v4 }
  0xf0   :  { %v203_v3 = vpop.f32.mrf.mxu0  ;;  %v316_v2 = vpop.f32.mrf.mxu1 }
  0xf1   :  { %4028 = vst [vmem:[#allocation31_spill] sm:$0xff] %v2998_v56  ;;  %4029 = vst [vmem:[#allocation32_spill] sm:$0xff] %v3001_v20  ;;  %v3003_v54 = vadd.f32 %v203_v3, %v110_v61  ;;  %v3006_v62 = vadd.f32 %v316_v2, %v2986_v60 }
  0xf3   :  { %4030 = vst [vmem:[#allocation33_spill] sm:$0xff] %v3003_v54  ;;  %4031 = vst [vmem:[#allocation34_spill] sm:$0xff] %v3006_v62 }
  0xf4   :  { %v207_v58 = vpop.f32.mrf.mxu0  ;;  %v320_v57 = vpop.f32.mrf.mxu1 }
  0xf5   :  { %v3008_v53 = vadd.f32 %v207_v58, %v106_v63  ;;  %v3011_v55 = vadd.f32 %v320_v57, %v2984_v4 }
  0xf6   :  { %v209_v52 = vpop.f32.mrf.mxu0  ;;  %v322_v29 = vpop.f32.mrf.mxu1 }
  0xf7   :  { %4032 = vst [vmem:[#allocation35_spill] sm:$0xff] %v3008_v53  ;;  %4033 = vst [vmem:[#allocation36_spill] sm:$0xff] %v3011_v55  ;;  %v3013_v56 = vadd.f32 %v209_v52, %v110_v61  ;;  %v3016_v47 = vadd.f32 %v322_v29, %v2986_v60 }
  0xf9   :  { %4034 = vst [vmem:[#allocation37_spill] sm:$0xff] %v3013_v56  ;;  %4035 = vst [vmem:[#allocation38_spill] sm:$0xff] %v3016_v47 }
  0xfa   :  { %v213_v20 = vpop.f32.mrf.mxu0  ;;  %v326_v3 = vpop.f32.mrf.mxu1 }
  0xfb   :  { %v3018_v54 = vadd.f32 %v213_v20, %v106_v63  ;;  %v3021_v2 = vadd.f32 %v326_v3, %v2984_v4 }
  0xfc   :  { %v215_v62 = vpop.f32.mrf.mxu0  ;;  %v328_v58 = vpop.f32.mrf.mxu1 }
  0xfd   :  { %4036 = vst [vmem:[#allocation39_spill] sm:$0xff] %v3018_v54  ;;  %4037 = vst [vmem:[#allocation40_spill] sm:$0xff] %v3021_v2  ;;  %v3023_v53 = vadd.f32 %v215_v62, %v110_v61  ;;  %v3026_v57 = vadd.f32 %v328_v58, %v2986_v60 }
  0xff   :  { %4038 = vst [vmem:[#allocation41_spill] sm:$0xff] %v3023_v53  ;;  %4039 = vst [vmem:[#allocation42_spill] sm:$0xff] %v3026_v57 }
 0x100   :  { %v219_v55 = vpop.f32.mrf.mxu0  ;;  %v332_v52 = vpop.f32.mrf.mxu1 }
 0x101   :  { %v3028_v56 = vadd.f32 %v219_v55, %v106_v63  ;;  %v3031_v29 = vadd.f32 %v332_v52, %v2984_v4 }
 0x102   :  { %v221_v47 = vpop.f32.mrf.mxu0  ;;  %v334_v20 = vpop.f32.mrf.mxu1 }
 0x103   :  { %4040 = vst [vmem:[#allocation43_spill] sm:$0xff] %v3028_v56  ;;  %4041 = vst [vmem:[#allocation44_spill] sm:$0xff] %v3031_v29  ;;  %v3033_v54 = vadd.f32 %v221_v47, %v110_v61  ;;  %v3036_v3 = vadd.f32 %v334_v20, %v2986_v60 }
 0x105   :  { %4042 = vst [vmem:[#allocation45_spill] sm:$0xff] %v3033_v54  ;;  %4043 = vst [vmem:[#allocation46_spill] sm:$0xff] %v3036_v3 }
 0x106   :  { %v225_v2 = vpop.f32.mrf.mxu0  ;;  %v338_v62 = vpop.f32.mrf.mxu1 }
 0x107   :  { %v3038_v53 = vadd.f32 %v225_v2, %v106_v63  ;;  %v3041_v58 = vadd.f32 %v338_v62, %v2984_v4 }
 0x108   :  { %v227_v57 = vpop.f32.mrf.mxu0  ;;  %v340_v55 = vpop.f32.mrf.mxu1 }
 0x109   :  { %4044 = vst [vmem:[#allocation47_spill] sm:$0xff] %v3038_v53  ;;  %4045 = vst [vmem:[#allocation48_spill] sm:$0xff] %v3041_v58  ;;  %v3043_v56 = vadd.f32 %v227_v57, %v110_v61  ;;  %v3046_v52 = vadd.f32 %v340_v55, %v2986_v60  ;;  %v190_v57 = vadd.f32 %v2973_v11, %v106_v63 }
 0x10a   :  { %v192_v55 = vadd.f32 %v2980_v0, %v110_v61 }
 0x10b   :  { %4046 = vst [vmem:[#allocation49_spill] sm:$0xff] %v3043_v56  ;;  %4047 = vst [vmem:[#allocation50_spill] sm:$0xff] %v3046_v52 }
 0x10c   :  { %v231_v29 = vpop.f32.mrf.mxu0  ;;  %v344_v47 = vpop.f32.mrf.mxu1 }
 0x10d   :  { %v3048_v54 = vadd.f32 %v231_v29, %v106_v63  ;;  %v3051_v20 = vadd.f32 %v344_v47, %v2984_v4 }
 0x10e   :  { %v233_v3 = vpop.f32.mrf.mxu0  ;;  %v346_v2 = vpop.f32.mrf.mxu1 }
 0x10f   :  { %4048 = vst [vmem:[#allocation51_spill] sm:$0xff] %v3048_v54  ;;  %4049 = vst [vmem:[#allocation52_spill] sm:$0xff] %v3051_v20  ;;  %v3053_v53 = vadd.f32 %v233_v3, %v110_v61  ;;  %v3056_v62 = vadd.f32 %v346_v2, %v2986_v60  ;;  %v303_v3 = vadd.f32 %v2975_v38, %v2984_v4 }
 0x110   :  { %v305_v2 = vadd.f32 %v2982_v1, %v2986_v60 }
 0x111   :  { %4050 = vst [vmem:[#allocation53_spill] sm:$0xff] %v3053_v53  ;;  %4051 = vst [vmem:[#allocation54_spill] sm:$0xff] %v3056_v62 }
 0x112   :  { %v520_v58 = vpop.f32.mrf.mxu0  ;;  %v591_v47 = vpop.f32.mrf.mxu1 }
 0x113   :  { %v596_v52 = vadd.f32 %v520_v58, %v190_v57  ;;  %v598_v20 = vadd.f32 %v591_v47, %v303_v3  ;;  %v4055_v47 = vld [vmem:[#allocation10_spill] sm:$0xff]  ;;  %v4056_v3 = vld [vmem:[#allocation11_spill] sm:$0xff] }
 0x114   :  { %v522_v56 = vpop.f32.mrf.mxu0  ;;  %v593_v53 = vpop.f32.mrf.mxu1 }
 0x115   :  { %v1977_v59 = vmul.f32 -1.442695, %v596_v52  ;;  %v597_v29 = vadd.f32 %v522_v56, %v192_v55  ;;  %v1979_v63 = vmul.f32 -1.442695, %v598_v20  ;;  %v599_v62 = vadd.f32 %v593_v53, %v305_v2  ;;  %v4052_v20 = vld [vmem:[#allocation7_spill] sm:$0xff]  ;;  %v4057_v2 = vld [vmem:[#allocation12_spill] sm:$0xff] }
 0x117   :  { %2056 = vpow2.f32 %v1977_v59  ;;  %v1978_v54 = vmul.f32 -1.442695, %v597_v29  ;;  %v4054_v29 = vld [vmem:[#allocation9_spill] sm:$0xff] }
 0x119   :  { %2058 = vpow2.f32 %v1978_v54 }
 0x11a   :  { %2060 = vpow2.f32 %v1979_v63  ;;  %v4058_v63 = vld [vmem:[#allocation13_spill] sm:$0xff] }
 0x124   :  { %v2057_v11 = vpop.eup %2056 }
 0x125   :  { %v609_v61 = vadd.f32 1.0, %v2057_v11  ;;  %v4059_v11 = vld [vmem:[#allocation14_spill] sm:$0xff] }
 0x126   :  { %v2059_v0 = vpop.eup %2058 }
 0x127   :  { %2062 = vrcp.f32 %v609_v61  ;;  %v610_v56 = vadd.f32 1.0, %v2059_v0  ;;  %v2061_v59 = vpop.eup %2060  ;;  %v4060_v61 = vld [vmem:[#allocation15_spill] sm:$0xff]  ;;  %v4061_v0 = vld [vmem:[#allocation16_spill] sm:$0xff] }
 0x128   :  { %2064 = vtanh.f32 %v599_v62  ;;  %v611_v4 = vadd.f32 1.0, %v2061_v59  ;;  %v4053_v62 = vld [vmem:[#allocation8_spill] sm:$0xff]  ;;  %v4063_v59 = vld [vmem:[#allocation18_spill] sm:$0xff] }
 0x129   :  { %2066 = vrcp.f32 %v610_v56  ;;  %v4062_v56 = vld [vmem:[#allocation17_spill] sm:$0xff] }
 0x12a   :  { %2068 = vrcp.f32 %v611_v4  ;;  %v4067_v4 = vld [vmem:[#allocation22_spill] sm:$0xff] }
 0x134   :  { %v2063_v54 = vpop.eup %2062 }
 0x135   :  { %v2065_v58 = vpop.eup %2064 }
 0x136   :  { %v2067_v52 = vpop.eup %2066  ;;  %v620_v57 = vmul.f32 %v2065_v58, %v2063_v54  ;;  %v4064_v54 = vld [vmem:[#allocation19_spill] sm:$0xff]  ;;  %v4065_v58 = vld [vmem:[#allocation20_spill] sm:$0xff] }
 0x137   :  { %v619_v38 = vmul.f32 0.0, %v2067_v52  ;;  %v2069_v53 = vpop.eup %2068  ;;  %v4066_v52 = vld [vmem:[#allocation21_spill] sm:$0xff] }
 0x139   :  { %v3064_v55 = vadd.f32 %v620_v57, %v619_v38  ;;  %v4068_v38 = vld [vmem:[#allocation23_spill] sm:$0xff]  ;;  %v4069_v57 = vld [vmem:[#allocation24_spill] sm:$0xff] }
 0x13b   :  { %2070 = vtanh.f32 %v3064_v55 }
 0x148   :  { %v2071_v60 = vpop.eup %2070 }
 0x149   :  { %v623_v1 = vmul.f32 %v2071_v60, %v2069_v53  ;;  %v4070_v53 = vld [vmem:[#allocation25_spill] sm:$0xff]  ;;  %v4071_v60 = vmov 0.0  }
 0x14b   :  { %696 = vmatmul.mubr.f32.vlgmr.msra.gmra.mxu0 %v623_v1  ;;  %767 = vmatmul.mubr.f32.vlgmr.msra.gmra.mxu1 %v623_v1  ;;  %v4072_v1 = vld [vmem:[#allocation26_spill] sm:$0xff] }
 0x14c   :  { %809 = vmatpush1.msra.mxu0 %v2495_v5  ;;  %880 = vmatpush1.msra.mxu1 %v2500_v6 }
 0x14d   :  { %810 = vmatprep.subr.mxu0 %v2505_v7  ;;  %881 = vmatprep.subr.mxu1 %v2510_v8 }
 0x14e   :  { %811 = vmatpush1.msra.mxu0 %v2519_v9  ;;  %882 = vmatpush1.msra.mxu1 %v2524_v10 }
 0x14f   :  { %812 = vmatprep.subr.mxu0 %v2536_v12  ;;  %883 = vmatprep.subr.mxu1 %v2541_v13 }
 0x150   :  { %813 = vmatpush1.msra.mxu0 %v2548_v14  ;;  %884 = vmatpush1.msra.mxu1 %v2553_v15 }
 0x151   :  { %814 = vmatprep.subr.mxu0 %v2558_v16  ;;  %885 = vmatprep.subr.mxu1 %v2563_v17 }
 0x152   :  { %815 = vmatpush1.msra.mxu0 %v2572_v18  ;;  %886 = vmatpush1.msra.mxu1 %v2577_v19 }
 0x153   :  { %816 = vmatprep.subr.mxu0 %v2589_v21  ;;  %887 = vmatprep.subr.mxu1 %v2594_v22 }
 0x154   :  { %817 = vmatpush1.msra.mxu0 %v2601_v23  ;;  %888 = vmatpush1.msra.mxu1 %v2606_v24 }
 0x155   :  { %818 = vmatprep.subr.mxu0 %v2611_v25  ;;  %889 = vmatprep.subr.mxu1 %v2616_v26 }
 0x156   :  { %819 = vmatpush1.msra.mxu0 %v2625_v27  ;;  %890 = vmatpush1.msra.mxu1 %v2630_v28 }
 0x157   :  { %820 = vmatprep.subr.mxu0 %v2642_v30  ;;  %891 = vmatprep.subr.mxu1 %v2647_v31 }
 0x158   :  { %821 = vmatpush1.msra.mxu0 %v2654_v32  ;;  %892 = vmatpush1.msra.mxu1 %v2659_v33 }
 0x159   :  { %822 = vmatprep.subr.mxu0 %v2664_v34  ;;  %893 = vmatprep.subr.mxu1 %v2669_v35 }
 0x15a   :  { %823 = vmatpush1.msra.mxu0 %v2678_v36  ;;  %894 = vmatpush1.msra.mxu1 %v2683_v37 }
 0x15b   :  { %824 = vmatprep.subr.mxu0 %v2695_v39  ;;  %895 = vmatprep.subr.mxu1 %v2700_v40 }
 0x15c   :  { %825 = vmatpush1.msra.mxu0 %v2707_v41  ;;  %896 = vmatpush1.msra.mxu1 %v2712_v42 }
 0x15d   :  { %826 = vmatprep.subr.mxu0 %v2717_v43  ;;  %897 = vmatprep.subr.mxu1 %v2722_v44 }
 0x15e   :  { %827 = vmatpush1.msra.mxu0 %v2731_v45  ;;  %898 = vmatpush1.msra.mxu1 %v2736_v46 }
 0x15f   :  { %828 = vmatprep.subr.mxu0 %v2748_v48  ;;  %899 = vmatprep.subr.mxu1 %v2753_v49 }
 0x160   :  { %829 = vmatpush1.msra.mxu0 %v2760_v50  ;;  %900 = vmatpush1.msra.mxu1 %v2765_v51 }
 0x161   :  { %830 = vmatprep.subr.mxu0 %v4052_v20  ;;  %901 = vmatprep.subr.mxu1 %v4053_v62 }
 0x162   :  { %831 = vmatpush1.msra.mxu0 %v4054_v29  ;;  %902 = vmatpush1.msra.mxu1 %v4055_v47 }
 0x163   :  { %832 = vmatprep.subr.mxu0 %v4056_v3  ;;  %903 = vmatprep.subr.mxu1 %v4057_v2 }
 0x164   :  { %833 = vmatpush1.msra.mxu0 %v4058_v63  ;;  %904 = vmatpush1.msra.mxu1 %v4059_v11  ;;  %v4077_v11 = vld [vmem:[#allocation28_spill] sm:$0xff] }
 0x165   :  { %834 = vmatprep.subr.mxu0 %v4060_v61  ;;  %905 = vmatprep.subr.mxu1 %v4061_v0 }
 0x166   :  { %835 = vmatpush1.msra.mxu0 %v4062_v56  ;;  %906 = vmatpush1.msra.mxu1 %v4063_v59  ;;  %v4073_v59 = vld [vmem:[#allocation5_spill] sm:$0xff] }
 0x167   :  { %836 = vmatprep.subr.mxu0 %v4064_v54  ;;  %907 = vmatprep.subr.mxu1 %v4065_v58  ;;  %v4074_v54 = vld [vmem:[#allocation6_spill] sm:$0xff] }
 0x168   :  { %837 = vmatpush1.msra.mxu0 %v4066_v52  ;;  %908 = vmatpush1.msra.mxu1 %v4067_v4  ;;  %v4075_v52 = vld [vmem:[#allocation27_spill] sm:$0xff] }
 0x169   :  { %838 = vmatprep.subr.mxu0 %v4068_v38  ;;  %909 = vmatprep.subr.mxu1 %v4069_v57  ;;  %v4076_v38 = vld [vmem:[#allocation29_spill] sm:$0xff] }
 0x16a   :  { %839 = vmatpush1.msra.mxu0 %v4070_v53  ;;  %872 = vmatprep.mubr.f32.mxu0 %v4071_v60 }
 0x16b   :  { %910 = vmatpush1.msra.mxu1 %v4072_v1  ;;  %943 = vmatprep.mubr.f32.mxu1 %v4071_v60  ;;  %v4078_v60 = vld [vmem:[#allocation30_spill] sm:$0xff] }
 0x16c   :  { %985 = vmatprep.subr.mxu0 %v4073_v59  ;;  %1056 = vmatprep.subr.mxu1 %v4074_v54 }
 0x20b   :  { %v697_v58 = vpop.f32.mrf.mxu0  ;;  %v768_v53 = vpop.f32.mrf.mxu1 }
 0x20c   :  { %v773_v56 = vadd.f32 %v697_v58, %v4075_v52  ;;  %v775_v63 = vadd.f32 %v768_v53, %v4077_v11 }
 0x20d   :  { %v699_v4 = vpop.f32.mrf.mxu0  ;;  %v770_v1 = vpop.f32.mrf.mxu1 }
 0x20e   :  { %v1980_v0 = vmul.f32 -1.442695, %v773_v56  ;;  %v774_v61 = vadd.f32 %v699_v4, %v4076_v38  ;;  %v1982_v2 = vmul.f32 -1.442695, %v775_v63  ;;  %v776_v3 = vadd.f32 %v770_v1, %v4078_v60  ;;  %v4101_v60 = vld [vmem:[#allocation32_spill] sm:$0xff] }
 0x210   :  { %2072 = vpow2.f32 %v1980_v0  ;;  %v1981_v57 = vmul.f32 -1.442695, %v774_v61 }
 0x212   :  { %2074 = vpow2.f32 %v1981_v57 }
 0x213   :  { %2076 = vpow2.f32 %v1982_v2 }
 0x214   :  { %2078 = vtanh.f32 %v776_v3 }
 0x21d   :  { %v2073_v59 = vpop.eup %2072 }
 0x21e   :  { %v786_v47 = vadd.f32 1.0, %v2073_v59 }
 0x21f   :  { %v2075_v54 = vpop.eup %2074 }
 0x220   :  { %2080 = vrcp.f32 %v786_v47  ;;  %v787_v58 = vadd.f32 1.0, %v2075_v54  ;;  %v2077_v56 = vpop.eup %2076 }
 0x221   :  { %v2079_v52 = vpop.eup %2078  ;;  %v788_v38 = vadd.f32 1.0, %v2077_v56 }
 0x222   :  { %2082 = vrcp.f32 %v787_v58  ;;  %v4102_v58 = vld [vmem:[#allocation34_spill] sm:$0xff] }
 0x223   :  { %2084 = vrcp.f32 %v788_v38 }
 0x22d   :  { %v2081_v0 = vpop.eup %2080 }
 0x22e   :  { %v797_v61 = vmul.f32 %v2081_v0, %v2079_v52 }
 0x22f   :  { %v2083_v4 = vpop.eup %2082 }
 0x230   :  { %v796_v11 = vmul.f32 %v2083_v4, %v3064_v55  ;;  %v2085_v63 = vpop.eup %2084 }
 0x232   :  { %v3138_v57 = vadd.f32 %v797_v61, %v796_v11 }
 0x234   :  { %2086 = vtanh.f32 %v3138_v57 }
 0x241   :  { %v2087_v2 = vpop.eup %2086 }
 0x242   :  { %v800_v53 = vmul.f32 %v2087_v2, %v2085_v63 }
 0x244   :  { %873 = vmatmul.mubr.f32.vlgmr.msra.gmra.mxu0 %v800_v53  ;;  %944 = vmatmul.mubr.f32.vlgmr.msra.gmra.mxu1 %v800_v53 }
 0x245   :  { %986 = vmatpush1.msra.mxu0 %v2495_v5  ;;  %1057 = vmatpush1.msra.mxu1 %v2500_v6  ;;  %v4079_v5 = vld [vmem:[#allocation10_spill] sm:$0xff]  ;;  %v4080_v6 = vld [vmem:[#allocation11_spill] sm:$0xff] }
 0x246   :  { %987 = vmatprep.subr.mxu0 %v2505_v7  ;;  %1058 = vmatprep.subr.mxu1 %v2510_v8  ;;  %v4081_v7 = vld [vmem:[#allocation12_spill] sm:$0xff]  ;;  %v4082_v8 = vld [vmem:[#allocation13_spill] sm:$0xff] }
 0x247   :  { %988 = vmatpush1.msra.mxu0 %v2519_v9  ;;  %1059 = vmatpush1.msra.mxu1 %v2524_v10  ;;  %v4083_v9 = vld [vmem:[#allocation14_spill] sm:$0xff]  ;;  %v4084_v10 = vld [vmem:[#allocation15_spill] sm:$0xff] }
 0x248   :  { %989 = vmatprep.subr.mxu0 %v2536_v12  ;;  %1060 = vmatprep.subr.mxu1 %v2541_v13  ;;  %v4085_v12 = vld [vmem:[#allocation16_spill] sm:$0xff]  ;;  %v4086_v13 = vld [vmem:[#allocation17_spill] sm:$0xff] }
 0x249   :  { %990 = vmatpush1.msra.mxu0 %v2548_v14  ;;  %1061 = vmatpush1.msra.mxu1 %v2553_v15  ;;  %v4087_v14 = vld [vmem:[#allocation18_spill] sm:$0xff]  ;;  %v4088_v15 = vld [vmem:[#allocation19_spill] sm:$0xff] }
 0x24a   :  { %991 = vmatprep.subr.mxu0 %v2558_v16  ;;  %1062 = vmatprep.subr.mxu1 %v2563_v17  ;;  %v4089_v16 = vld [vmem:[#allocation20_spill] sm:$0xff]  ;;  %v4090_v17 = vld [vmem:[#allocation21_spill] sm:$0xff] }
 0x24b   :  { %992 = vmatpush1.msra.mxu0 %v2572_v18  ;;  %1063 = vmatpush1.msra.mxu1 %v2577_v19  ;;  %v4091_v18 = vld [vmem:[#allocation22_spill] sm:$0xff]  ;;  %v4092_v19 = vld [vmem:[#allocation23_spill] sm:$0xff] }
 0x24c   :  { %993 = vmatprep.subr.mxu0 %v2589_v21  ;;  %1064 = vmatprep.subr.mxu1 %v2594_v22  ;;  %v4093_v21 = vld [vmem:[#allocation24_spill] sm:$0xff]  ;;  %v4094_v22 = vld [vmem:[#allocation25_spill] sm:$0xff] }
 0x24d   :  { %994 = vmatpush1.msra.mxu0 %v2601_v23  ;;  %1065 = vmatpush1.msra.mxu1 %v2606_v24  ;;  %v4095_v23 = vmov 0.0   ;;  %v4096_v24 = vld [vmem:[#allocation26_spill] sm:$0xff] }
 0x24e   :  { %995 = vmatprep.subr.mxu0 %v2611_v25  ;;  %1066 = vmatprep.subr.mxu1 %v2616_v26  ;;  %v3208_v25 = vld [vmem:[%s3907_s2 + $0x1e8] sm:$0xff]  ;;  %v3214_v26 = vld [vmem:[%s3907_s2 + $0x1f8] sm:$0xff] }
 0x24f   :  { %996 = vmatpush1.msra.mxu0 %v2625_v27  ;;  %1067 = vmatpush1.msra.mxu1 %v2630_v28  ;;  %4097 = vst [vmem:[#allocation7_spill] sm:$0xff] %v3208_v25  ;;  %4098 = vst [vmem:[#allocation8_spill] sm:$0xff] %v3214_v26  ;;  %v4099_v28 = vld [vmem:[#allocation31_spill] sm:$0xff] }
 0x250   :  { %997 = vmatprep.subr.mxu0 %v2642_v30  ;;  %1068 = vmatprep.subr.mxu1 %v2647_v31 }
 0x251   :  { %998 = vmatpush1.msra.mxu0 %v2654_v32  ;;  %1069 = vmatpush1.msra.mxu1 %v2659_v33  ;;  %v4100_v33 = vld [vmem:[#allocation33_spill] sm:$0xff] }
 0x252   :  { %999 = vmatprep.subr.mxu0 %v2664_v34  ;;  %1070 = vmatprep.subr.mxu1 %v2669_v35 }
 0x253   :  { %1000 = vmatpush1.msra.mxu0 %v2678_v36  ;;  %1071 = vmatpush1.msra.mxu1 %v2683_v37 }
 0x254   :  { %1001 = vmatprep.subr.mxu0 %v2695_v39  ;;  %1072 = vmatprep.subr.mxu1 %v2700_v40 }
 0x255   :  { %1002 = vmatpush1.msra.mxu0 %v2707_v41  ;;  %1073 = vmatpush1.msra.mxu1 %v2712_v42 }
 0x256   :  { %1003 = vmatprep.subr.mxu0 %v2717_v43  ;;  %1074 = vmatprep.subr.mxu1 %v2722_v44 }
 0x257   :  { %1004 = vmatpush1.msra.mxu0 %v2731_v45  ;;  %1075 = vmatpush1.msra.mxu1 %v2736_v46 }
 0x258   :  { %1005 = vmatprep.subr.mxu0 %v2748_v48  ;;  %1076 = vmatprep.subr.mxu1 %v2753_v49 }
 0x259   :  { %1006 = vmatpush1.msra.mxu0 %v2760_v50  ;;  %1077 = vmatpush1.msra.mxu1 %v2765_v51 }
 0x25a   :  { %1007 = vmatprep.subr.mxu0 %v4052_v20  ;;  %1078 = vmatprep.subr.mxu1 %v4053_v62 }
 0x25b   :  { %1008 = vmatpush1.msra.mxu0 %v4054_v29  ;;  %1079 = vmatpush1.msra.mxu1 %v4079_v5 }
 0x25c   :  { %1009 = vmatprep.subr.mxu0 %v4080_v6  ;;  %1080 = vmatprep.subr.mxu1 %v4081_v7 }
 0x25d   :  { %1010 = vmatpush1.msra.mxu0 %v4082_v8  ;;  %1081 = vmatpush1.msra.mxu1 %v4083_v9 }
 0x25e   :  { %1011 = vmatprep.subr.mxu0 %v4084_v10  ;;  %1082 = vmatprep.subr.mxu1 %v4085_v12 }
 0x25f   :  { %1012 = vmatpush1.msra.mxu0 %v4086_v13  ;;  %1083 = vmatpush1.msra.mxu1 %v4087_v14 }
 0x260   :  { %1013 = vmatprep.subr.mxu0 %v4088_v15  ;;  %1084 = vmatprep.subr.mxu1 %v4089_v16 }
 0x261   :  { %1014 = vmatpush1.msra.mxu0 %v4090_v17  ;;  %1085 = vmatpush1.msra.mxu1 %v4091_v18 }
 0x262   :  { %1015 = vmatprep.subr.mxu0 %v4092_v19  ;;  %1086 = vmatprep.subr.mxu1 %v4093_v21 }
 0x263   :  { %1016 = vmatpush1.msra.mxu0 %v4094_v22  ;;  %1049 = vmatprep.mubr.f32.mxu0 %v4095_v23 }
 0x264   :  { %1087 = vmatpush1.msra.mxu1 %v4096_v24  ;;  %1120 = vmatprep.mubr.f32.mxu1 %v4095_v23 }
 0x265   :  { %1162 = vmatprep.subr.mxu0 %v3208_v25  ;;  %1233 = vmatprep.subr.mxu1 %v3214_v26 }
 0x304   :  { %v874_v27 = vpop.f32.mrf.mxu0  ;;  %v945_v3 = vpop.f32.mrf.mxu1 }
 0x305   :  { %v950_v30 = vadd.f32 %v874_v27, %v4099_v28  ;;  %v952_v1 = vadd.f32 %v945_v3, %v4101_v60  ;;  %v3246_v3 = vld [vmem:[%s3907_s2 + $0x1d8] sm:$0xff]  ;;  %v3252_v60 = vld [vmem:[%s3907_s2 + $0x1c0] sm:$0xff] }
 0x306   :  { %v876_v31 = vpop.f32.mrf.mxu0  ;;  %v947_v59 = vpop.f32.mrf.mxu1 }
 0x307   :  { %v1983_v32 = vmul.f32 -1.442695, %v950_v30  ;;  %v951_v55 = vadd.f32 %v876_v31, %v4100_v33  ;;  %v1985_v54 = vmul.f32 -1.442695, %v952_v1  ;;  %v953_v56 = vadd.f32 %v947_v59, %v4102_v58  ;;  %v3258_v1 = vld [vmem:[%s3907_s2 + $0x1d0] sm:$0xff]  ;;  %v3264_v59 = vld [vmem:[%s3907_s2 + $0x1a8] sm:$0xff] }
 0x308   :  { %v3276_v58 = vld [vmem:[%s3907_s2 + $0x1a0] sm:$0xff] }
 0x309   :  { %2088 = vpow2.f32 %v1983_v32  ;;  %v1984_v47 = vmul.f32 -1.442695, %v951_v55  ;;  %v3228_v55 = vld [vmem:[%s3907_s2 + $0x1e0] sm:$0xff] }
 0x30b   :  { %2090 = vpow2.f32 %v1984_v47  ;;  %v3240_v47 = vld [vmem:[%s3907_s2 + $0x1c8] sm:$0xff] }
 0x30c   :  { %2092 = vpow2.f32 %v1985_v54  ;;  %v3270_v54 = vld [vmem:[%s3907_s2 + $0x1b8] sm:$0xff] }
 0x30d   :  { %2094 = vtanh.f32 %v953_v56  ;;  %v3282_v56 = vld [vmem:[%s3907_s2 + $0x1b0] sm:$0xff] }
 0x316   :  { %v2089_v52 = vpop.eup %2088 }
 0x317   :  { %v963_v0 = vadd.f32 1.0, %v2089_v52  ;;  %v3288_v52 = vld [vmem:[%s3907_s2 + $0x188] sm:$0xff] }
 0x318   :  { %v2091_v61 = vpop.eup %2090 }
 0x319   :  { %2096 = vrcp.f32 %v963_v0  ;;  %v964_v4 = vadd.f32 1.0, %v2091_v61  ;;  %v2093_v38 = vpop.eup %2092  ;;  %v3294_v0 = vld [vmem:[%s3907_s2 + $0x198] sm:$0xff]  ;;  %v3300_v61 = vld [vmem:[%s3907_s2 + $0x180] sm:$0xff] }
 0x31a   :  { %v2095_v11 = vpop.eup %2094  ;;  %v965_v27 = vadd.f32 1.0, %v2093_v38  ;;  %v3312_v38 = vld [vmem:[%s3907_s2 + $0x168] sm:$0xff] }
 0x31b   :  { %2098 = vrcp.f32 %v964_v4  ;;  %v3306_v4 = vld [vmem:[%s3907_s2 + $0x190] sm:$0xff] }
 0x31c   :  { %2100 = vrcp.f32 %v965_v27  ;;  %v3342_v27 = vld [vmem:[%s3907_s2 + $0x158] sm:$0xff] }
 0x326   :  { %v2097_v63 = vpop.eup %2096 }
 0x327   :  { %v974_v2 = vmul.f32 %v2097_v63, %v2095_v11  ;;  %v3318_v11 = vld [vmem:[%s3907_s2 + $0x178] sm:$0xff]  ;;  %v3324_v63 = vld [vmem:[%s3907_s2 + $0x160] sm:$0xff] }
 0x328   :  { %v2099_v53 = vpop.eup %2098 }
 0x329   :  { %v973_v28 = vmul.f32 %v2099_v53, %v3138_v57  ;;  %v2101_v31 = vpop.eup %2100  ;;  %v3234_v57 = vld [vmem:[%s3907_s2 + $0x1f0] sm:$0xff]  ;;  %v3336_v53 = vld [vmem:[%s3907_s2 + $0x148] sm:$0xff] }
 0x32b   :  { %v3222_v30 = vadd.f32 %v974_v2, %v973_v28  ;;  %v3330_v2 = vld [vmem:[%s3907_s2 + $0x170] sm:$0xff]  ;;  %v3348_v28 = vld [vmem:[%s3907_s2 + $0x140] sm:$0xff] }
 0x32c   :  { %4103 = vst [vmem:[#allocation9_spill] sm:$0xff] %v3348_v28 }
 0x32d   :  { %2102 = vtanh.f32 %v3222_v30 }
 0x33a   :  { %v2103_v32 = vpop.eup %2102 }
 0x33b   :  { %v977_v33 = vmul.f32 %v2103_v32, %v2101_v31  ;;  %v3354_v31 = vld [vmem:[%s3907_s2 + $0x150] sm:$0xff]  ;;  %v3360_v32 = vld [vmem:[%s3907_s2 + $0x128] sm:$0xff] }
 0x33c   :  { %4104 = vst [vmem:[#allocation5_spill] sm:$0xff] %v3354_v31 }
 0x33d   :  { %1050 = vmatmul.mubr.f32.vlgmr.msra.gmra.mxu0 %v977_v33  ;;  %1121 = vmatmul.mubr.f32.vlgmr.msra.gmra.mxu1 %v977_v33  ;;  %v3366_v33 = vld [vmem:[%s3907_s2 + $0x138] sm:$0xff] }
 0x33e   :  { %1163 = vmatpush1.msra.mxu0 %v3228_v55  ;;  %1234 = vmatpush1.msra.mxu1 %v3234_v57 }
 0x33f   :  { %1164 = vmatprep.subr.mxu0 %v3240_v47  ;;  %1235 = vmatprep.subr.mxu1 %v3246_v3 }
 0x340   :  { %1165 = vmatpush1.msra.mxu0 %v3252_v60  ;;  %1236 = vmatpush1.msra.mxu1 %v3258_v1 }
 0x341   :  { %1166 = vmatprep.subr.mxu0 %v3264_v59  ;;  %1237 = vmatprep.subr.mxu1 %v3270_v54 }
 0x342   :  { %1167 = vmatpush1.msra.mxu0 %v3276_v58  ;;  %1238 = vmatpush1.msra.mxu1 %v3282_v56 }
 0x343   :  { %1168 = vmatprep.subr.mxu0 %v3288_v52  ;;  %1239 = vmatprep.subr.mxu1 %v3294_v0 }
 0x344   :  { %1169 = vmatpush1.msra.mxu0 %v3300_v61  ;;  %1240 = vmatpush1.msra.mxu1 %v3306_v4 }
 0x345   :  { %1170 = vmatprep.subr.mxu0 %v3312_v38  ;;  %1241 = vmatprep.subr.mxu1 %v3318_v11 }
 0x346   :  { %1171 = vmatpush1.msra.mxu0 %v3324_v63  ;;  %1242 = vmatpush1.msra.mxu1 %v3330_v2 }
 0x347   :  { %1172 = vmatprep.subr.mxu0 %v3336_v53  ;;  %1243 = vmatprep.subr.mxu1 %v3342_v27 }
 0x348   :  { %1173 = vmatpush1.msra.mxu0 %v3348_v28  ;;  %1244 = vmatpush1.msra.mxu1 %v3354_v31  ;;  %v3372_v28 = vld [vmem:[%s3907_s2 + $0x120] sm:$0xff]  ;;  %v3378_v31 = vld [vmem:[%s3907_s2 + $0x130] sm:$0xff] }
 0x349   :  { %1174 = vmatprep.subr.mxu0 %v3360_v32  ;;  %1245 = vmatprep.subr.mxu1 %v3366_v33 }
 0x34a   :  { %1175 = vmatpush1.msra.mxu0 %v3372_v28  ;;  %1246 = vmatpush1.msra.mxu1 %v3378_v31 }
 0x34b   :  { %1176 = vmatprep.subr.mxu0 %v2664_v34  ;;  %1247 = vmatprep.subr.mxu1 %v2669_v35  ;;  %v4105_v35 = vld [vmem:[#allocation35_spill] sm:$0xff] }
 0x34c   :  { %1177 = vmatpush1.msra.mxu0 %v2678_v36  ;;  %1248 = vmatpush1.msra.mxu1 %v2683_v37 }
 0x34d   :  { %1178 = vmatprep.subr.mxu0 %v2695_v39  ;;  %1249 = vmatprep.subr.mxu1 %v2700_v40  ;;  %v4106_v40 = vld [vmem:[#allocation37_spill] sm:$0xff] }
 0x34e   :  { %1179 = vmatpush1.msra.mxu0 %v2707_v41  ;;  %1250 = vmatpush1.msra.mxu1 %v2712_v42 }
 0x34f   :  { %1180 = vmatprep.subr.mxu0 %v2717_v43  ;;  %1251 = vmatprep.subr.mxu1 %v2722_v44  ;;  %v4107_v44 = vld [vmem:[#allocation36_spill] sm:$0xff] }
 0x350   :  { %1181 = vmatpush1.msra.mxu0 %v2731_v45  ;;  %1252 = vmatpush1.msra.mxu1 %v2736_v46 }
 0x351   :  { %1182 = vmatprep.subr.mxu0 %v2748_v48  ;;  %1253 = vmatprep.subr.mxu1 %v2753_v49  ;;  %v4108_v49 = vld [vmem:[#allocation38_spill] sm:$0xff] }
 0x352   :  { %1183 = vmatpush1.msra.mxu0 %v2760_v50  ;;  %1254 = vmatpush1.msra.mxu1 %v2765_v51 }
 0x353   :  { %1184 = vmatprep.subr.mxu0 %v4052_v20  ;;  %1255 = vmatprep.subr.mxu1 %v4053_v62 }
 0x354   :  { %1185 = vmatpush1.msra.mxu0 %v4054_v29  ;;  %1256 = vmatpush1.msra.mxu1 %v4079_v5 }
 0x355   :  { %1186 = vmatprep.subr.mxu0 %v4080_v6  ;;  %1257 = vmatprep.subr.mxu1 %v4081_v7 }
 0x356   :  { %1187 = vmatpush1.msra.mxu0 %v4082_v8  ;;  %1258 = vmatpush1.msra.mxu1 %v4083_v9 }
 0x357   :  { %1188 = vmatprep.subr.mxu0 %v4084_v10  ;;  %1259 = vmatprep.subr.mxu1 %v4085_v12 }
 0x358   :  { %1189 = vmatpush1.msra.mxu0 %v4086_v13  ;;  %1260 = vmatpush1.msra.mxu1 %v4087_v14 }
 0x359   :  { %1190 = vmatprep.subr.mxu0 %v4088_v15  ;;  %1261 = vmatprep.subr.mxu1 %v4089_v16 }
 0x35a   :  { %1191 = vmatpush1.msra.mxu0 %v4090_v17  ;;  %1262 = vmatpush1.msra.mxu1 %v4091_v18  ;;  %v4109_v17 = vld [vmem:[#allocation9_spill] sm:$0xff] }
 0x35b   :  { %1192 = vmatprep.subr.mxu0 %v4092_v19  ;;  %1263 = vmatprep.subr.mxu1 %v4093_v21  ;;  %v4110_v18 = vld [vmem:[#allocation5_spill] sm:$0xff]  ;;  %v3458_v19 = vld [vmem:[%s3907_s2 + $0x108] sm:$0xff]  ;;  %v3464_v21 = vld [vmem:[%s3907_s2 + $0x118] sm:$0xff] }
 0x35c   :  { %1193 = vmatpush1.msra.mxu0 %v4094_v22  ;;  %1226 = vmatprep.mubr.f32.mxu0 %v4095_v23  ;;  %v3470_v22 = vld [vmem:[%s3907_s2 + $0x100] sm:$0xff] }
 0x35d   :  { %1264 = vmatpush1.msra.mxu1 %v4096_v24  ;;  %1297 = vmatprep.mubr.f32.mxu1 %v4095_v23  ;;  %v3476_v24 = vld [vmem:[%s3907_s2 + $0x110] sm:$0xff] }
 0x35e   :  { %1339 = vmatprep.subr.mxu0 %v3208_v25  ;;  %1410 = vmatprep.subr.mxu1 %v3214_v26 }
 0x3fd   :  { %v1051_v34 = vpop.f32.mrf.mxu0  ;;  %v1122_v43 = vpop.f32.mrf.mxu1 }
 0x3fe   :  { %v1127_v36 = vadd.f32 %v1051_v34, %v4105_v35  ;;  %v1129_v45 = vadd.f32 %v1122_v43, %v4107_v44  ;;  %v3488_v34 = vld [vmem:[%s3907_s2 + $0xf8] sm:$0xff]  ;;  %v3494_v35 = vld [vmem:[%s3907_s2 + $0xe0] sm:$0xff] }
 0x3ff   :  { %v1053_v37 = vpop.f32.mrf.mxu0  ;;  %v1124_v46 = vpop.f32.mrf.mxu1  ;;  %v3536_v43 = vld [vmem:[%s3907_s2 + $0xb8] sm:$0xff]  ;;  %v3542_v44 = vld [vmem:[%s3907_s2 + $0xa0] sm:$0xff] }
 0x400   :  { %v1986_v39 = vmul.f32 -1.442695, %v1127_v36  ;;  %v1128_v41 = vadd.f32 %v1053_v37, %v4106_v40  ;;  %v1988_v48 = vmul.f32 -1.442695, %v1129_v45  ;;  %v1130_v50 = vadd.f32 %v1124_v46, %v4108_v49  ;;  %v3500_v36 = vld [vmem:[%s3907_s2 + $0xf0] sm:$0xff]  ;;  %v3506_v37 = vld [vmem:[%s3907_s2 + $0xc8] sm:$0xff] }
 0x401   :  { %v3518_v40 = vld [vmem:[%s3907_s2 + $0xc0] sm:$0xff]  ;;  %v3548_v45 = vld [vmem:[%s3907_s2 + $0xb0] sm:$0xff]  ;;  %v3554_v46 = vld [vmem:[%s3907_s2 + $0x88] sm:$0xff] }
 0x402   :  { %2104 = vpow2.f32 %v1986_v39  ;;  %v1987_v42 = vmul.f32 -1.442695, %v1128_v41  ;;  %v3512_v39 = vld [vmem:[%s3907_s2 + $0xd8] sm:$0xff]  ;;  %v3524_v41 = vld [vmem:[%s3907_s2 + $0xd0] sm:$0xff]  ;;  %v3566_v49 = vld [vmem:[%s3907_s2 + $0x80] sm:$0xff] }
 0x404   :  { %2106 = vpow2.f32 %v1987_v42  ;;  %v3530_v42 = vld [vmem:[%s3907_s2 + $0xa8] sm:$0xff] }
 0x405   :  { %2108 = vpow2.f32 %v1988_v48  ;;  %v3560_v48 = vld [vmem:[%s3907_s2 + $0x98] sm:$0xff] }
 0x406   :  { %2110 = vtanh.f32 %v1130_v50  ;;  %v3572_v50 = vld [vmem:[%s3907_s2 + $0x90] sm:$0xff] }
 0x407   :  { %4111 = vst [vmem:[#allocation6_spill] sm:$0xff] %v3572_v50 }
 0x40f   :  { %v2105_v51 = vpop.eup %2104 }
 0x410   :  { %v1140_v20 = vadd.f32 1.0, %v2105_v51  ;;  %v3578_v51 = vld [vmem:[%s3907_s2 + $0x68] sm:$0xff] }
 0x411   :  { %v2107_v62 = vpop.eup %2106  ;;  %4112 = vst [vmem:[#allocation27_spill] sm:$0xff] %v3578_v51 }
 0x412   :  { %2112 = vrcp.f32 %v1140_v20  ;;  %v1141_v29 = vadd.f32 1.0, %v2107_v62  ;;  %v2109_v5 = vpop.eup %2108  ;;  %v3584_v20 = vld [vmem:[%s3907_s2 + $0x78] sm:$0xff]  ;;  %v3590_v62 = vld [vmem:[%s3907_s2 + $0x60] sm:$0xff] }
 0x413   :  { %v2111_v6 = vpop.eup %2110  ;;  %v1142_v10 = vadd.f32 1.0, %v2109_v5  ;;  %4113 = vst [vmem:[#allocation29_spill] sm:$0xff] %v3584_v20  ;;  %4114 = vst [vmem:[#allocation28_spill] sm:$0xff] %v3590_v62  ;;  %v3602_v5 = vld [vmem:[%s3907_s2 + $0x48] sm:$0xff] }
 0x414   :  { %2114 = vrcp.f32 %v1141_v29  ;;  %v3596_v29 = vld [vmem:[%s3907_s2 + $0x70] sm:$0xff]  ;;  %4116 = vst [vmem:[#allocation10_spill] sm:$0xff] %v3602_v5 }
 0x415   :  { %2116 = vrcp.f32 %v1142_v10  ;;  %4115 = vst [vmem:[#allocation30_spill] sm:$0xff] %v3596_v29  ;;  %v3632_v10 = vld [vmem:[%s3907_s2 + $0x38] sm:$0xff] }
 0x416   :  { %4121 = vst [vmem:[#allocation15_spill] sm:$0xff] %v3632_v10 }
 0x41f   :  { %v2113_v7 = vpop.eup %2112 }
 0x420   :  { %v1151_v8 = vmul.f32 %v2113_v7, %v2111_v6  ;;  %v3608_v6 = vld [vmem:[%s3907_s2 + $0x58] sm:$0xff]  ;;  %v3614_v7 = vld [vmem:[%s3907_s2 + $0x40] sm:$0xff] }
 0x421   :  { %v2115_v9 = vpop.eup %2114  ;;  %4117 = vst [vmem:[#allocation11_spill] sm:$0xff] %v3608_v6  ;;  %4118 = vst [vmem:[#allocation12_spill] sm:$0xff] %v3614_v7 }
 0x422   :  { %v1150_v12 = vmul.f32 %v2115_v9, %v3222_v30  ;;  %v2117_v14 = vpop.eup %2116  ;;  %v3482_v30 = vld [vmem:[%s3907_s2 + $0xe8] sm:$0xff] }
 0x423   :  { %v3626_v9 = vld [vmem:[%s3907_s2 + $0x28] sm:$0xff] }
 0x424   :  { %v3426_v13 = vadd.f32 %v1151_v8, %v1150_v12  ;;  %v3620_v8 = vld [vmem:[%s3907_s2 + $0x50] sm:$0xff]  ;;  %4120 = vst [vmem:[#allocation14_spill] sm:$0xff] %v3626_v9  ;;  %v3638_v12 = vld [vmem:[%s3907_s2 + $0x20] sm:$0xff] }
 0x425   :  { %4119 = vst [vmem:[#allocation13_spill] sm:$0xff] %v3620_v8  ;;  %4122 = vst [vmem:[#allocation16_spill] sm:$0xff] %v3638_v12 }
 0x426   :  { %2118 = vtanh.f32 %v3426_v13 }
 0x433   :  { %v2119_v15 = vpop.eup %2118 }
 0x434   :  { %v1154_v16 = vmul.f32 %v2119_v15, %v2117_v14  ;;  %v3644_v14 = vld [vmem:[%s3907_s2 + $0x30] sm:$0xff]  ;;  %v3650_v15 = vld [vmem:[%s3907_s2 + $0x8] sm:$0xff] }
 0x435   :  { %4123 = vst [vmem:[#allocation17_spill] sm:$0xff] %v3644_v14  ;;  %4124 = vst [vmem:[#allocation18_spill] sm:$0xff] %v3650_v15 }
 0x436   :  { %1227 = vmatmul.mubr.f32.vlgmr.msra.gmra.mxu0 %v1154_v16  ;;  %1298 = vmatmul.mubr.f32.vlgmr.msra.gmra.mxu1 %v1154_v16  ;;  %v3656_v16 = vld [vmem:[%s3907_s2 + $0x18] sm:$0xff] }
 0x437   :  { %1340 = vmatpush1.msra.mxu0 %v3228_v55  ;;  %1411 = vmatpush1.msra.mxu1 %v3234_v57  ;;  %4125 = vst [vmem:[#allocation19_spill] sm:$0xff] %v3656_v16 }
 0x438   :  { %1341 = vmatprep.subr.mxu0 %v3240_v47  ;;  %1412 = vmatprep.subr.mxu1 %v3246_v3 }
 0x439   :  { %1342 = vmatpush1.msra.mxu0 %v3252_v60  ;;  %1413 = vmatpush1.msra.mxu1 %v3258_v1 }
 0x43a   :  { %1343 = vmatprep.subr.mxu0 %v3264_v59  ;;  %1414 = vmatprep.subr.mxu1 %v3270_v54 }
 0x43b   :  { %1344 = vmatpush1.msra.mxu0 %v3276_v58  ;;  %1415 = vmatpush1.msra.mxu1 %v3282_v56 }
 0x43c   :  { %1345 = vmatprep.subr.mxu0 %v3288_v52  ;;  %1416 = vmatprep.subr.mxu1 %v3294_v0 }
 0x43d   :  { %1346 = vmatpush1.msra.mxu0 %v3300_v61  ;;  %1417 = vmatpush1.msra.mxu1 %v3306_v4 }
 0x43e   :  { %1347 = vmatprep.subr.mxu0 %v3312_v38  ;;  %1418 = vmatprep.subr.mxu1 %v3318_v11 }
 0x43f   :  { %1348 = vmatpush1.msra.mxu0 %v3324_v63  ;;  %1419 = vmatpush1.msra.mxu1 %v3330_v2 }
 0x440   :  { %1349 = vmatprep.subr.mxu0 %v3336_v53  ;;  %1420 = vmatprep.subr.mxu1 %v3342_v27 }
 0x441   :  { %1350 = vmatpush1.msra.mxu0 %v4109_v17  ;;  %1421 = vmatpush1.msra.mxu1 %v4110_v18 }
 0x442   :  { %1351 = vmatprep.subr.mxu0 %v3360_v32  ;;  %1422 = vmatprep.subr.mxu1 %v3366_v33 }
 0x443   :  { %1352 = vmatpush1.msra.mxu0 %v3372_v28  ;;  %1423 = vmatpush1.msra.mxu1 %v3378_v31 }
 0x444   :  { %1353 = vmatprep.subr.mxu0 %v3458_v19  ;;  %1424 = vmatprep.subr.mxu1 %v3464_v21 }
 0x445   :  { %1354 = vmatpush1.msra.mxu0 %v3470_v22  ;;  %1425 = vmatpush1.msra.mxu1 %v3476_v24 }
 0x446   :  { %1355 = vmatprep.subr.mxu0 %v3482_v30  ;;  %1426 = vmatprep.subr.mxu1 %v3488_v34 }
 0x447   :  { %1356 = vmatpush1.msra.mxu0 %v3494_v35  ;;  %1427 = vmatpush1.msra.mxu1 %v3500_v36 }
 0x448   :  { %1357 = vmatprep.subr.mxu0 %v3506_v37  ;;  %1428 = vmatprep.subr.mxu1 %v3512_v39 }
 0x449   :  { %1358 = vmatpush1.msra.mxu0 %v3518_v40  ;;  %1429 = vmatpush1.msra.mxu1 %v3524_v41 }
 0x44a   :  { %1359 = vmatprep.subr.mxu0 %v3530_v42  ;;  %1430 = vmatprep.subr.mxu1 %v3536_v43 }
 0x44b   :  { %1360 = vmatpush1.msra.mxu0 %v3542_v44  ;;  %1431 = vmatpush1.msra.mxu1 %v3548_v45 }
 0x44c   :  { %1361 = vmatprep.subr.mxu0 %v3554_v46  ;;  %1432 = vmatprep.subr.mxu1 %v3560_v48 }
 0x44d   :  { %1362 = vmatpush1.msra.mxu0 %v3566_v49  ;;  %1433 = vmatpush1.msra.mxu1 %v3572_v50 }
 0x44e   :  { %1363 = vmatprep.subr.mxu0 %v3578_v51  ;;  %1434 = vmatprep.subr.mxu1 %v3584_v20 }
 0x44f   :  { %1364 = vmatpush1.msra.mxu0 %v3590_v62  ;;  %1435 = vmatpush1.msra.mxu1 %v3596_v29  ;;  %v4130_v29 = vld [vmem:[#allocation40_spill] sm:$0xff] }
 0x450   :  { %1365 = vmatprep.subr.mxu0 %v3602_v5  ;;  %1436 = vmatprep.subr.mxu1 %v3608_v6 }
 0x451   :  { %1366 = vmatpush1.msra.mxu0 %v3614_v7  ;;  %1437 = vmatpush1.msra.mxu1 %v3620_v8  ;;  %v4129_v8 = vld [vmem:[#allocation41_spill] sm:$0xff] }
 0x452   :  { %1367 = vmatprep.subr.mxu0 %v3626_v9  ;;  %1438 = vmatprep.subr.mxu1 %v3632_v10 }
 0x453   :  { %1368 = vmatpush1.msra.mxu0 %v3638_v12  ;;  %1439 = vmatpush1.msra.mxu1 %v3644_v14  ;;  %v3662_v12 = vld [vmem:[%s3907_s2] sm:$0xff]  ;;  %v4128_v14 = vld [vmem:[#allocation39_spill] sm:$0xff] }
 0x454   :  { %1369 = vmatprep.subr.mxu0 %v3650_v15  ;;  %1440 = vmatprep.subr.mxu1 %v3656_v16  ;;  %4126 = vst [vmem:[#allocation20_spill] sm:$0xff] %v3662_v12  ;;  %v3669_v15 = vld [vmem:[%s3907_s2 + $0x10] sm:$0xff] }
 0x455   :  { %1370 = vmatpush1.msra.mxu0 %v3662_v12  ;;  %1403 = vmatprep.mubr.f32.mxu0 %v4095_v23  ;;  %4127 = vst [vmem:[#allocation21_spill] sm:$0xff] %v3669_v15 }
 0x456   :  { %1441 = vmatpush1.msra.mxu1 %v3669_v15  ;;  %1474 = vmatprep.mubr.f32.mxu1 %v4095_v23  ;;  %v4131_v23 = vld [vmem:[#allocation42_spill] sm:$0xff] }
 0x457   :  { %1516 = vmatprep.subr.mxu0 %v3208_v25  ;;  %1587 = vmatprep.subr.mxu1 %v3214_v26 }
 0x4f6   :  { %v1228_v16 = vpop.f32.mrf.mxu0  ;;  %v1299_v5 = vpop.f32.mrf.mxu1 }
 0x4f7   :  { %v1304_v10 = vadd.f32 %v1228_v16, %v4128_v14  ;;  %v1306_v62 = vadd.f32 %v1299_v5, %v4130_v29  ;;  %v4138_v16 = vld [vmem:[#allocation11_spill] sm:$0xff] }
 0x4f8   :  { %v1230_v9 = vpop.f32.mrf.mxu0  ;;  %v1301_v15 = vpop.f32.mrf.mxu1 }
 0x4f9   :  { %v1989_v12 = vmul.f32 -1.442695, %v1304_v10  ;;  %v1305_v7 = vadd.f32 %v1230_v9, %v4129_v8  ;;  %v1991_v20 = vmul.f32 -1.442695, %v1306_v62  ;;  %v1307_v51 = vadd.f32 %v1301_v15, %v4131_v23  ;;  %v4136_v62 = vld [vmem:[#allocation30_spill] sm:$0xff] }
 0x4fa   :  { %v4137_v15 = vld [vmem:[#allocation10_spill] sm:$0xff] }
 0x4fb   :  { %2120 = vpow2.f32 %v1989_v12  ;;  %v1990_v6 = vmul.f32 -1.442695, %v1305_v7 }
 0x4fd   :  { %2122 = vpow2.f32 %v1990_v6 }
 0x4fe   :  { %2124 = vpow2.f32 %v1991_v20 }
 0x4ff   :  { %2126 = vtanh.f32 %v1307_v51  ;;  %v4135_v51 = vld [vmem:[#allocation28_spill] sm:$0xff] }
 0x508   :  { %v2121_v25 = vpop.eup %2120 }
 0x509   :  { %v1317_v50 = vadd.f32 1.0, %v2121_v25 }
 0x50a   :  { %v2123_v26 = vpop.eup %2122 }
 0x50b   :  { %2128 = vrcp.f32 %v1317_v50  ;;  %v1318_v14 = vadd.f32 1.0, %v2123_v26  ;;  %v2125_v10 = vpop.eup %2124  ;;  %v4132_v26 = vld [vmem:[#allocation6_spill] sm:$0xff]  ;;  %v4134_v50 = vld [vmem:[#allocation29_spill] sm:$0xff] }
 0x50c   :  { %v2127_v8 = vpop.eup %2126  ;;  %v1319_v12 = vadd.f32 1.0, %v2125_v10  ;;  %v4140_v10 = vld [vmem:[#allocation13_spill] sm:$0xff] }
 0x50d   :  { %2130 = vrcp.f32 %v1318_v14  ;;  %v4139_v14 = vld [vmem:[#allocation12_spill] sm:$0xff] }
 0x50e   :  { %2132 = vrcp.f32 %v1319_v12  ;;  %v4145_v12 = vld [vmem:[#allocation18_spill] sm:$0xff] }
 0x518   :  { %v2129_v9 = vpop.eup %2128 }
 0x519   :  { %v1328_v7 = vmul.f32 %v2129_v9, %v2127_v8  ;;  %v4141_v8 = vld [vmem:[#allocation14_spill] sm:$0xff]  ;;  %v4142_v9 = vld [vmem:[#allocation15_spill] sm:$0xff] }
 0x51a   :  { %v2131_v6 = vpop.eup %2130 }
 0x51b   :  { %v1327_v29 = vmul.f32 %v2131_v6, %v3426_v13  ;;  %v2133_v23 = vpop.eup %2132  ;;  %v4133_v13 = vld [vmem:[#allocation27_spill] sm:$0xff]  ;;  %v4144_v6 = vld [vmem:[#allocation17_spill] sm:$0xff] }
 0x51d   :  { %v3680_v5 = vadd.f32 %v1328_v7, %v1327_v29  ;;  %v4143_v7 = vld [vmem:[#allocation16_spill] sm:$0xff]  ;;  %v4146_v29 = vld [vmem:[#allocation19_spill] sm:$0xff] }
 0x51f   :  { %2134 = vtanh.f32 %v3680_v5 }
 0x52c   :  { %v2135_v25 = vpop.eup %2134 }
 0x52d   :  { %v1331_v20 = vmul.f32 %v2135_v25, %v2133_v23  ;;  %v4147_v23 = vld [vmem:[#allocation20_spill] sm:$0xff]  ;;  %v4148_v25 = vmov 0.0  }
 0x52f   :  { %1404 = vmatmul.mubr.f32.vlgmr.msra.gmra.mxu0 %v1331_v20  ;;  %1475 = vmatmul.mubr.f32.vlgmr.msra.gmra.mxu1 %v1331_v20  ;;  %v4149_v20 = vld [vmem:[#allocation21_spill] sm:$0xff] }
 0x530   :  { %1517 = vmatpush1.msra.mxu0 %v3228_v55  ;;  %1588 = vmatpush1.msra.mxu1 %v3234_v57 }
 0x531   :  { %1518 = vmatprep.subr.mxu0 %v3240_v47  ;;  %1589 = vmatprep.subr.mxu1 %v3246_v3 }
 0x532   :  { %1519 = vmatpush1.msra.mxu0 %v3252_v60  ;;  %1590 = vmatpush1.msra.mxu1 %v3258_v1 }
 0x533   :  { %1520 = vmatprep.subr.mxu0 %v3264_v59  ;;  %1591 = vmatprep.subr.mxu1 %v3270_v54 }
 0x534   :  { %1521 = vmatpush1.msra.mxu0 %v3276_v58  ;;  %1592 = vmatpush1.msra.mxu1 %v3282_v56 }
 0x535   :  { %1522 = vmatprep.subr.mxu0 %v3288_v52  ;;  %1593 = vmatprep.subr.mxu1 %v3294_v0 }
 0x536   :  { %1523 = vmatpush1.msra.mxu0 %v3300_v61  ;;  %1594 = vmatpush1.msra.mxu1 %v3306_v4 }
 0x537   :  { %1524 = vmatprep.subr.mxu0 %v3312_v38  ;;  %1595 = vmatprep.subr.mxu1 %v3318_v11 }
 0x538   :  { %1525 = vmatpush1.msra.mxu0 %v3324_v63  ;;  %1596 = vmatpush1.msra.mxu1 %v3330_v2 }
 0x539   :  { %1526 = vmatprep.subr.mxu0 %v3336_v53  ;;  %1597 = vmatprep.subr.mxu1 %v3342_v27 }
 0x53a   :  { %1527 = vmatpush1.msra.mxu0 %v4109_v17  ;;  %1598 = vmatpush1.msra.mxu1 %v4110_v18 }
 0x53b   :  { %1528 = vmatprep.subr.mxu0 %v3360_v32  ;;  %1599 = vmatprep.subr.mxu1 %v3366_v33 }
 0x53c   :  { %1529 = vmatpush1.msra.mxu0 %v3372_v28  ;;  %1600 = vmatpush1.msra.mxu1 %v3378_v31 }
 0x53d   :  { %1530 = vmatprep.subr.mxu0 %v3458_v19  ;;  %1601 = vmatprep.subr.mxu1 %v3464_v21 }
 0x53e   :  { %1531 = vmatpush1.msra.mxu0 %v3470_v22  ;;  %1602 = vmatpush1.msra.mxu1 %v3476_v24 }
 0x53f   :  { %1532 = vmatprep.subr.mxu0 %v3482_v30  ;;  %1603 = vmatprep.subr.mxu1 %v3488_v34 }
 0x540   :  { %1533 = vmatpush1.msra.mxu0 %v3494_v35  ;;  %1604 = vmatpush1.msra.mxu1 %v3500_v36 }
 0x541   :  { %1534 = vmatprep.subr.mxu0 %v3506_v37  ;;  %1605 = vmatprep.subr.mxu1 %v3512_v39 }
 0x542   :  { %1535 = vmatpush1.msra.mxu0 %v3518_v40  ;;  %1606 = vmatpush1.msra.mxu1 %v3524_v41 }
 0x543   :  { %1536 = vmatprep.subr.mxu0 %v3530_v42  ;;  %1607 = vmatprep.subr.mxu1 %v3536_v43 }
 0x544   :  { %1537 = vmatpush1.msra.mxu0 %v3542_v44  ;;  %1608 = vmatpush1.msra.mxu1 %v3548_v45 }
 0x545   :  { %1538 = vmatprep.subr.mxu0 %v3554_v46  ;;  %1609 = vmatprep.subr.mxu1 %v3560_v48 }
 0x546   :  { %1539 = vmatpush1.msra.mxu0 %v3566_v49  ;;  %1610 = vmatpush1.msra.mxu1 %v4132_v26 }
 0x547   :  { %1540 = vmatprep.subr.mxu0 %v4133_v13  ;;  %1611 = vmatprep.subr.mxu1 %v4134_v50 }
 0x548   :  { %1541 = vmatpush1.msra.mxu0 %v4135_v51  ;;  %1612 = vmatpush1.msra.mxu1 %v4136_v62  ;;  %v4154_v62 = vld [vmem:[#allocation44_spill] sm:$0xff] }
 0x549   :  { %1542 = vmatprep.subr.mxu0 %v4137_v15  ;;  %1613 = vmatprep.subr.mxu1 %v4138_v16 }
 0x54a   :  { %1543 = vmatpush1.msra.mxu0 %v4139_v14  ;;  %1614 = vmatpush1.msra.mxu1 %v4140_v10  ;;  %v4150_v10 = vld [vmem:[#allocation7_spill] sm:$0xff] }
 0x54b   :  { %1544 = vmatprep.subr.mxu0 %v4141_v8  ;;  %1615 = vmatprep.subr.mxu1 %v4142_v9  ;;  %v4151_v8 = vld [vmem:[#allocation8_spill] sm:$0xff] }
 0x54c   :  { %1545 = vmatpush1.msra.mxu0 %v4143_v7  ;;  %1616 = vmatpush1.msra.mxu1 %v4144_v6  ;;  %v4152_v7 = vld [vmem:[#allocation43_spill] sm:$0xff] }
 0x54d   :  { %1546 = vmatprep.subr.mxu0 %v4145_v12  ;;  %1617 = vmatprep.subr.mxu1 %v4146_v29  ;;  %v4153_v12 = vld [vmem:[#allocation45_spill] sm:$0xff] }
 0x54e   :  { %1547 = vmatpush1.msra.mxu0 %v4147_v23  ;;  %1580 = vmatprep.mubr.f32.mxu0 %v4148_v25 }
 0x54f   :  { %1618 = vmatpush1.msra.mxu1 %v4149_v20  ;;  %1651 = vmatprep.mubr.f32.mxu1 %v4148_v25  ;;  %v4155_v25 = vld [vmem:[#allocation46_spill] sm:$0xff] }
 0x550   :  { %1693 = vmatprep.subr.mxu0 %v4150_v10  ;;  %1764 = vmatprep.subr.mxu1 %v4151_v8 }
 0x5ef   :  { %v1405_v9 = vpop.f32.mrf.mxu0  ;;  %v1476_v23 = vpop.f32.mrf.mxu1 }
 0x5f0   :  { %v1481_v14 = vadd.f32 %v1405_v9, %v4152_v7  ;;  %v1483_v51 = vadd.f32 %v1476_v23, %v4154_v62 }
 0x5f1   :  { %v1407_v6 = vpop.f32.mrf.mxu0  ;;  %v1478_v20 = vpop.f32.mrf.mxu1 }
 0x5f2   :  { %v1992_v16 = vmul.f32 -1.442695, %v1481_v14  ;;  %v1482_v15 = vadd.f32 %v1407_v6, %v4153_v12  ;;  %v1994_v50 = vmul.f32 -1.442695, %v1483_v51  ;;  %v1484_v13 = vadd.f32 %v1478_v20, %v4155_v25  ;;  %v1887_v25 = vld [vmem:[%s3909_s4 + $0x78] sm:$0xff]  ;;  %v1886_v20 = vld [vmem:[%s3909_s4 + $0x70] sm:$0xff] }
 0x5f4   :  { %2136 = vpow2.f32 %v1992_v16  ;;  %v1993_v29 = vmul.f32 -1.442695, %v1482_v15 }
 0x5f6   :  { %2138 = vpow2.f32 %v1993_v29 }
 0x5f7   :  { %2140 = vpow2.f32 %v1994_v50 }
 0x5f8   :  { %2142 = vtanh.f32 %v1484_v13 }
 0x601   :  { %v2137_v10 = vpop.eup %2136 }
 0x602   :  { %v1494_v26 = vadd.f32 1.0, %v2137_v10  ;;  %v1885_v10 = vld [vmem:[%s3909_s4 + $0x68] sm:$0xff] }
 0x603   :  { %v2139_v8 = vpop.eup %2138 }
 0x604   :  { %2144 = vrcp.f32 %v1494_v26  ;;  %v1495_v9 = vadd.f32 1.0, %v2139_v8  ;;  %v2141_v14 = vpop.eup %2140  ;;  %v1884_v8 = vld [vmem:[%s3909_s4 + $0x60] sm:$0xff] }
 0x605   :  { %v2143_v7 = vpop.eup %2142  ;;  %v1496_v12 = vadd.f32 1.0, %v2141_v14  ;;  %v1882_v14 = vld [vmem:[%s3909_s4 + $0x50] sm:$0xff] }
 0x606   :  { %2146 = vrcp.f32 %v1495_v9  ;;  %v1883_v9 = vld [vmem:[%s3909_s4 + $0x58] sm:$0xff] }
 0x607   :  { %2148 = vrcp.f32 %v1496_v12  ;;  %v1877_v12 = vld [vmem:[%s3909_s4 + $0x28] sm:$0xff] }
 0x611   :  { %v2145_v16 = vpop.eup %2144 }
 0x612   :  { %v1505_v15 = vmul.f32 %v2145_v16, %v2143_v7  ;;  %v1881_v7 = vld [vmem:[%s3909_s4 + $0x48] sm:$0xff]  ;;  %v1880_v16 = vld [vmem:[%s3909_s4 + $0x40] sm:$0xff] }
 0x613   :  { %v2147_v6 = vpop.eup %2146 }
 0x614   :  { %v1504_v62 = vmul.f32 %v2147_v6, %v3680_v5  ;;  %v2149_v51 = vpop.eup %2148  ;;  %v1878_v6 = vld [vmem:[%s3909_s4 + $0x30] sm:$0xff] }
 0x616   :  { %v3754_v29 = vadd.f32 %v1505_v15, %v1504_v62  ;;  %v1879_v15 = vld [vmem:[%s3909_s4 + $0x38] sm:$0xff]  ;;  %v1876_v62 = vld [vmem:[%s3909_s4 + $0x20] sm:$0xff] }
 0x618   :  { %2150 = vtanh.f32 %v3754_v29 }
 0x625   :  { %v2151_v50 = vpop.eup %2150 }
 0x626   :  { %v1508_v23 = vmul.f32 %v2151_v50, %v2149_v51  ;;  %v1874_v51 = vld [vmem:[%s3909_s4 + $0x10] sm:$0xff]  ;;  %v1873_v50 = vld [vmem:[%s3909_s4 + $0x8] sm:$0xff] }
 0x628   :  { %1581 = vmatmul.mubr.f32.vlgmr.msra.gmra.mxu0 %v1508_v23  ;;  %1652 = vmatmul.mubr.f32.vlgmr.msra.gmra.mxu1 %v1508_v23  ;;  %v1872_v23 = vld [vmem:[%s3909_s4] sm:$0xff] }
 0x629   :  { %1694 = vmatpush1.msra.mxu0 %v3228_v55  ;;  %1765 = vmatpush1.msra.mxu1 %v3234_v57  ;;  %v4156_v55 = vld [vmem:[#allocation6_spill] sm:$0xff]  ;;  %v4157_v57 = vld [vmem:[#allocation27_spill] sm:$0xff] }
 0x62a   :  { %1695 = vmatprep.subr.mxu0 %v3240_v47  ;;  %1766 = vmatprep.subr.mxu1 %v3246_v3  ;;  %v4158_v47 = vld [vmem:[#allocation29_spill] sm:$0xff]  ;;  %v4159_v3 = vld [vmem:[#allocation28_spill] sm:$0xff] }
 0x62b   :  { %1696 = vmatpush1.msra.mxu0 %v3252_v60  ;;  %1767 = vmatpush1.msra.mxu1 %v3258_v1  ;;  %v4160_v60 = vld [vmem:[#allocation30_spill] sm:$0xff] }
 0x62c   :  { %1697 = vmatprep.subr.mxu0 %v3264_v59  ;;  %1768 = vmatprep.subr.mxu1 %v3270_v54  ;;  %v4161_v1 = vld [vmem:[#allocation10_spill] sm:$0xff]  ;;  %v4162_v59 = vld [vmem:[#allocation11_spill] sm:$0xff]  ;;  %v4163_v54 = vld [vmem:[#allocation12_spill] sm:$0xff] }
 0x62d   :  { %1698 = vmatpush1.msra.mxu0 %v3276_v58  ;;  %1769 = vmatpush1.msra.mxu1 %v3282_v56  ;;  %v4164_v58 = vld [vmem:[#allocation13_spill] sm:$0xff]  ;;  %v4165_v56 = vld [vmem:[#allocation14_spill] sm:$0xff] }
 0x62e   :  { %1699 = vmatprep.subr.mxu0 %v3288_v52  ;;  %1770 = vmatprep.subr.mxu1 %v3294_v0  ;;  %v4166_v52 = vld [vmem:[#allocation15_spill] sm:$0xff]  ;;  %v4167_v0 = vld [vmem:[#allocation16_spill] sm:$0xff] }
 0x62f   :  { %1700 = vmatpush1.msra.mxu0 %v3300_v61  ;;  %1771 = vmatpush1.msra.mxu1 %v3306_v4  ;;  %v4168_v61 = vld [vmem:[#allocation17_spill] sm:$0xff]  ;;  %v4169_v4 = vld [vmem:[#allocation18_spill] sm:$0xff] }
 0x630   :  { %1701 = vmatprep.subr.mxu0 %v3312_v38  ;;  %1772 = vmatprep.subr.mxu1 %v3318_v11  ;;  %v4170_v38 = vld [vmem:[#allocation19_spill] sm:$0xff]  ;;  %v4171_v11 = vld [vmem:[#allocation20_spill] sm:$0xff] }
 0x631   :  { %1702 = vmatpush1.msra.mxu0 %v3324_v63  ;;  %1773 = vmatpush1.msra.mxu1 %v3330_v2  ;;  %v4172_v63 = vmov 0.0   ;;  %v4173_v2 = vld [vmem:[#allocation21_spill] sm:$0xff] }
 0x632   :  { %1703 = vmatprep.subr.mxu0 %v3336_v53  ;;  %1774 = vmatprep.subr.mxu1 %v3342_v27  ;;  %v4174_v27 = vld [vmem:[#allocation47_spill] sm:$0xff] }
 0x633   :  { %1704 = vmatpush1.msra.mxu0 %v4109_v17  ;;  %1775 = vmatpush1.msra.mxu1 %v4110_v18 }
 0x634   :  { %1705 = vmatprep.subr.mxu0 %v3360_v32  ;;  %1776 = vmatprep.subr.mxu1 %v3366_v33  ;;  %v4175_v33 = vld [vmem:[#allocation49_spill] sm:$0xff] }
 0x635   :  { %1706 = vmatpush1.msra.mxu0 %v3372_v28  ;;  %1777 = vmatpush1.msra.mxu1 %v3378_v31 }
 0x636   :  { %1707 = vmatprep.subr.mxu0 %v3458_v19  ;;  %1778 = vmatprep.subr.mxu1 %v3464_v21  ;;  %v4176_v21 = vld [vmem:[#allocation48_spill] sm:$0xff] }
 0x637   :  { %1708 = vmatpush1.msra.mxu0 %v3470_v22  ;;  %1779 = vmatpush1.msra.mxu1 %v3476_v24 }
 0x638   :  { %1709 = vmatprep.subr.mxu0 %v3482_v30  ;;  %1780 = vmatprep.subr.mxu1 %v3488_v34  ;;  %v4177_v34 = vld [vmem:[#allocation50_spill] sm:$0xff] }
 0x639   :  { %1710 = vmatpush1.msra.mxu0 %v3494_v35  ;;  %1781 = vmatpush1.msra.mxu1 %v3500_v36 }
 0x63a   :  { %1711 = vmatprep.subr.mxu0 %v3506_v37  ;;  %1782 = vmatprep.subr.mxu1 %v3512_v39 }
 0x63b   :  { %1712 = vmatpush1.msra.mxu0 %v3518_v40  ;;  %1783 = vmatpush1.msra.mxu1 %v3524_v41 }
 0x63c   :  { %1713 = vmatprep.subr.mxu0 %v3530_v42  ;;  %1784 = vmatprep.subr.mxu1 %v3536_v43 }
 0x63d   :  { %1714 = vmatpush1.msra.mxu0 %v3542_v44  ;;  %1785 = vmatpush1.msra.mxu1 %v3548_v45 }
 0x63e   :  { %1715 = vmatprep.subr.mxu0 %v3554_v46  ;;  %1786 = vmatprep.subr.mxu1 %v3560_v48 }
 0x63f   :  { %1716 = vmatpush1.msra.mxu0 %v3566_v49  ;;  %1787 = vmatpush1.msra.mxu1 %v4156_v55 }
 0x640   :  { %1717 = vmatprep.subr.mxu0 %v4157_v57  ;;  %1788 = vmatprep.subr.mxu1 %v4158_v47  ;;  %v4178_v57 = vld [vmem:[#allocation51_spill] sm:$0xff] }
 0x641   :  { %1718 = vmatpush1.msra.mxu0 %v4159_v3  ;;  %1789 = vmatpush1.msra.mxu1 %v4160_v60 }
 0x642   :  { %1719 = vmatprep.subr.mxu0 %v4161_v1  ;;  %1790 = vmatprep.subr.mxu1 %v4162_v59  ;;  %v4179_v1 = vld [vmem:[#allocation53_spill] sm:$0xff] }
 0x643   :  { %1720 = vmatpush1.msra.mxu0 %v4163_v54  ;;  %1791 = vmatpush1.msra.mxu1 %v4164_v58 }
 0x644   :  { %1721 = vmatprep.subr.mxu0 %v4165_v56  ;;  %1792 = vmatprep.subr.mxu1 %v4166_v52  ;;  %v4180_v56 = vld [vmem:[#allocation52_spill] sm:$0xff] }
 0x645   :  { %1722 = vmatpush1.msra.mxu0 %v4167_v0  ;;  %1793 = vmatpush1.msra.mxu1 %v4168_v61 }
 0x646   :  { %1723 = vmatprep.subr.mxu0 %v4169_v4  ;;  %1794 = vmatprep.subr.mxu1 %v4170_v38  ;;  %v4181_v4 = vld [vmem:[#allocation54_spill] sm:$0xff] }
 0x647   :  { %1724 = vmatpush1.msra.mxu0 %v4171_v11  ;;  %1757 = vmatprep.mubr.f32.mxu0 %v4172_v63 }
 0x648   :  { %1795 = vmatpush1.msra.mxu1 %v4173_v2  ;;  %1828 = vmatprep.mubr.f32.mxu1 %v4172_v63 }
 0x649   :  { %2019 = vmatprep.subr.mxu0 %v4172_v63 }
 0x6e8   :  { %v1582_v53 = vpop.f32.mrf.mxu0  ;;  %v1653_v19 = vpop.f32.mrf.mxu1 }
 0x6e9   :  { %v1658_v28 = vadd.f32 %v1582_v53, %v4174_v27  ;;  %v1660_v22 = vadd.f32 %v1653_v19, %v4176_v21 }
 0x6ea   :  { %v1584_v31 = vpop.f32.mrf.mxu0  ;;  %v1655_v24 = vpop.f32.mrf.mxu1 }
 0x6eb   :  { %v1995_v32 = vmul.f32 -1.442695, %v1658_v28  ;;  %v1659_v17 = vadd.f32 %v1584_v31, %v4175_v33  ;;  %v1997_v30 = vmul.f32 -1.442695, %v1660_v22  ;;  %v1661_v35 = vadd.f32 %v1655_v24, %v4177_v34 }
 0x6ed   :  { %2152 = vpow2.f32 %v1995_v32  ;;  %v1996_v18 = vmul.f32 -1.442695, %v1659_v17 }
 0x6ef   :  { %2154 = vpow2.f32 %v1996_v18 }
 0x6f0   :  { %2156 = vpow2.f32 %v1997_v30  ;;  %v2001_v30 = vld [vmem:[%s3910_s5] ss:$0 sm:$0xff] }
 0x6f1   :  { %2158 = vtanh.f32 %v1661_v35 }
 0x6fa   :  { %v2153_v36 = vpop.eup %2152 }
 0x6fb   :  { %v1671_v37 = vadd.f32 1.0, %v2153_v36 }
 0x6fc   :  { %v2155_v39 = vpop.eup %2154 }
 0x6fd   :  { %2160 = vrcp.f32 %v1671_v37  ;;  %v1672_v40 = vadd.f32 1.0, %v2155_v39  ;;  %v2157_v41 = vpop.eup %2156 }
 0x6fe   :  { %v2159_v42 = vpop.eup %2158  ;;  %v1673_v46 = vadd.f32 1.0, %v2157_v41 }
 0x6ff   :  { %2162 = vrcp.f32 %v1672_v40 }
 0x700   :  { %2164 = vrcp.f32 %v1673_v46 }
 0x70a   :  { %v2161_v43 = vpop.eup %2160 }
 0x70b   :  { %v1682_v44 = vmul.f32 %v2161_v43, %v2159_v42 }
 0x70c   :  { %v2163_v45 = vpop.eup %2162 }
 0x70d   :  { %v1681_v48 = vmul.f32 %v2163_v45, %v3754_v29  ;;  %v2165_v5 = vpop.eup %2164  ;;  %v1875_v29 = vld [vmem:[%s3909_s4 + $0x18] sm:$0xff] }
 0x70f   :  { %v3827_v49 = vadd.f32 %v1682_v44, %v1681_v48 }
 0x711   :  { %2166 = vtanh.f32 %v3827_v49 }
 0x71e   :  { %v2167_v26 = vpop.eup %2166 }
 0x71f   :  { %v1685_v13 = vmul.f32 %v2167_v26, %v2165_v5 }
 0x721   :  { %1758 = vmatmul.mubr.f32.vlgmr.msra.gmra.mxu0 %v1685_v13  ;;  %1829 = vmatmul.mubr.f32.vlgmr.msra.gmra.mxu1 %v1685_v13 }
 0x722   :  { %2020 = vmatpush3.msra.mxu0 %v1887_v25  ;;  %2051 = vmatprep.mubr.msk.f32.mxu0 %vm2249_vm0, %v4172_v63 }
 0x723   :  { %2021 = vmatprep.subr.mxu0 %v4172_v63 }
 0x724   :  { %2022 = vmatpush3.msra.mxu0 %v1886_v20 }
 0x725   :  { %2023 = vmatprep.subr.mxu0 %v4172_v63 }
 0x726   :  { %2024 = vmatpush3.msra.mxu0 %v1885_v10 }
 0x727   :  { %2025 = vmatprep.subr.mxu0 %v4172_v63 }
 0x728   :  { %2026 = vmatpush3.msra.mxu0 %v1884_v8 }
 0x729   :  { %2027 = vmatprep.subr.mxu0 %v4172_v63 }
 0x72a   :  { %2028 = vmatpush3.msra.mxu0 %v1883_v9 }
 0x72b   :  { %2029 = vmatprep.subr.mxu0 %v4172_v63 }
 0x72c   :  { %2030 = vmatpush3.msra.mxu0 %v1882_v14 }
 0x72d   :  { %2031 = vmatprep.subr.mxu0 %v4172_v63 }
 0x72e   :  { %2032 = vmatpush3.msra.mxu0 %v1881_v7 }
 0x72f   :  { %2033 = vmatprep.subr.mxu0 %v4172_v63 }
 0x730   :  { %2034 = vmatpush3.msra.mxu0 %v1880_v16 }
 0x731   :  { %2035 = vmatprep.subr.mxu0 %v4172_v63 }
 0x732   :  { %2036 = vmatpush3.msra.mxu0 %v1879_v15 }
 0x733   :  { %2037 = vmatprep.subr.mxu0 %v4172_v63 }
 0x734   :  { %2038 = vmatpush3.msra.mxu0 %v1878_v6 }
 0x735   :  { %2039 = vmatprep.subr.mxu0 %v4172_v63 }
 0x736   :  { %2040 = vmatpush3.msra.mxu0 %v1877_v12 }
 0x737   :  { %2041 = vmatprep.subr.mxu0 %v4172_v63 }
 0x738   :  { %2042 = vmatpush3.msra.mxu0 %v1876_v62 }
 0x739   :  { %2043 = vmatprep.subr.mxu0 %v4172_v63 }
 0x73a   :  { %2044 = vmatpush3.msra.mxu0 %v1875_v29 }
 0x73b   :  { %2045 = vmatprep.subr.mxu0 %v4172_v63 }
 0x73c   :  { %2046 = vmatpush3.msra.mxu0 %v1874_v51 }
 0x73d   :  { %2047 = vmatprep.subr.mxu0 %v4172_v63 }
 0x73e   :  { %2048 = vmatpush3.msra.mxu0 %v1873_v50 }
 0x73f   :  { %2049 = vmatprep.subr.mxu0 %v4172_v63 }
 0x740   :  { %2050 = vmatpush3.msra.mxu0 %v1872_v23 }
 0x7e1   :  { %v1759_v55 = vpop.f32.mrf.mxu0  ;;  %v1830_v58 = vpop.f32.mrf.mxu1 }
 0x7e2   :  { %v1835_v47 = vadd.f32 %v1759_v55, %v4178_v57  ;;  %v1837_v52 = vadd.f32 %v1830_v58, %v4180_v56 }
 0x7e3   :  { %v1761_v3 = vpop.f32.mrf.mxu0  ;;  %v1832_v0 = vpop.f32.mrf.mxu1 }
 0x7e4   :  { %v1998_v60 = vmul.f32 -1.442695, %v1835_v47  ;;  %v1836_v59 = vadd.f32 %v1761_v3, %v4179_v1  ;;  %v2000_v61 = vmul.f32 -1.442695, %v1837_v52  ;;  %v1838_v38 = vadd.f32 %v1832_v0, %v4181_v4 }
 0x7e6   :  { %2168 = vpow2.f32 %v1998_v60  ;;  %v1999_v54 = vmul.f32 -1.442695, %v1836_v59 }
 0x7e8   :  { %2170 = vpow2.f32 %v1999_v54 }
 0x7e9   :  { %2172 = vpow2.f32 %v2000_v61 }
 0x7ea   :  { %2174 = vtanh.f32 %v1838_v38 }
 0x7f3   :  { %v2169_v11 = vpop.eup %2168 }
 0x7f4   :  { %v1848_v63 = vadd.f32 1.0, %v2169_v11 }
 0x7f5   :  { %v2171_v2 = vpop.eup %2170 }
 0x7f6   :  { %2176 = vrcp.f32 %v1848_v63  ;;  %v1849_v53 = vadd.f32 1.0, %v2171_v2  ;;  %v2173_v27 = vpop.eup %2172 }
 0x7f7   :  { %v2175_v28 = vpop.eup %2174  ;;  %v1850_v17 = vadd.f32 1.0, %v2173_v27 }
 0x7f8   :  { %2178 = vrcp.f32 %v1849_v53 }
 0x7f9   :  { %2180 = vrcp.f32 %v1850_v17 }
 0x803   :  { %v2177_v31 = vpop.eup %2176 }
 0x804   :  { %v1859_v32 = vmul.f32 %v2177_v31, %v2175_v28 }
 0x805   :  { %v2179_v33 = vpop.eup %2178 }
 0x806   :  { %v1858_v18 = vmul.f32 %v2179_v33, %v3827_v49  ;;  %v2181_v21 = vpop.eup %2180 }
 0x808   :  { %v1860_v19 = vadd.f32 %v1859_v32, %v1858_v18 }
 0x80a   :  { %2182 = vtanh.f32 %v1860_v19 }
 0x817   :  { %v2183_v22 = vpop.eup %2182 }
 0x818   :  { %v1862_v24 = vmul.f32 %v2183_v22, %v2181_v21 }
 0x81a   :  { %2052 = vmatmul.mubr.f32.vlgmr.msra.gmra.mxu0 %v1862_v24 }
 0x8da   :  { %v1961_v34 = vpop.f32.mrf.mxu0 }
 0x8db   :  { %v1962_v35 = vadd.f32 %v2001_v30, %v1961_v34 }
 0x8dc   :  { %v2053_v36 = vpop.f32.mrf.mxu0 }
 0x8dd   :  { %1965 = vst [vmem:[%s3911_s6] sm:$0xff] %v1962_v35 }

</bundles_post_ra>
